<compile_context>
chip_gen: v7x
topology: tpu7x:2x2x1
jax: 0.10.0
libtpu: 0.0.40
codegen_flags: <defaults>
</compile_context>

<pallas_src>
import jax
import jax.numpy as jnp
from jax import lax
from jax.experimental import pallas as pl
from jax.experimental.pallas import tpu as pltpu

# ----------------------------- synthetic config (small) -----------------------------
B       = 2                 # batch
S_TEXT  = 8                 # text tokens per example
T_MEL   = 16                # mel frames per example (target_len)
SEQ     = S_TEXT + T_MEL    # per-example sequence length seen by the transformer
D       = 32                # transformer hidden size
D_FF    = 64                # MLP hidden size
N_MELS  = 8                 # mel bins
VOCAB   = 64                # toy vocab (after setup_tokenizer-style resize)
TN      = T_MEL * N_MELS    # 128: flat (lane-dense) mel layout, one full vreg row


def _examples_per_grid_step():
    """CB = examples fused into one grid step.

    v5e / v6e have a single TensorCore: fuse the whole batch into one step (grid=(1,)).
    v7x has 2 TensorCores: keep one example per step so the parallel grid axis uses
    both cores.
    """
    try:
        kind = jax.devices()[0].device_kind.lower().replace(" ", "")
    except Exception:
        return B
    if "v7" in kind or "tpu7" in kind:
        return max(1, B // 2)
    return B


CB   = _examples_per_grid_step()     # examples per grid step (2 on v5e/v6e, 1 on v7x)
GRID = B // CB                       # grid steps
CS   = CB * SEQ                      # fused sequence length per step

# -------------------- per-example activation slab layout, (ACT_ROWS, TN) -------------
ACT_ROWS   = 16
ROW_A_X0   = 0      # x0 (noise), flat 128 lanes
ROW_A_X1   = 1      # x1 (ground-truth mel), flat 128 lanes
ROW_A_T    = 2      # flow time t broadcast over 128 lanes
ROW_A_TEMB = 3      # timestep embedding, lanes 0:D
ROW_A_TEXT = 8      # text token embeddings, S_TEXT rows, lanes 0:D (8-row aligned)

# ----------------- packed parameter/constant slab layout, (N_ROWS, TN) f32 -----------
ROW_W_IN  = 0                    # (TN, D)    w_mel_in tiled once per frame
ROW_WBLK  = ROW_W_IN + TN        # (D, 128)   lanes 0:32 Wq@Wk^T | 32:64 Wv@Wo | 64:128 W1
ROW_W2    = ROW_WBLK + D         # (D_FF, D)
ROW_W_OUT = ROW_W2 + D_FF        # (D, TN)    w_out tiled once per frame (flat head)
ROW_VEC   = ROW_W_OUT + D        # 8 rows: ln1_g, ln1_b, ln2_g, ln2_b, b1, b2, b_out(flat)
ROW_RED   = ROW_VEC + 8          # (CB, CB*T_MEL) per-example frame-reduce matrix
ROW_CMASK = ROW_RED + 8          # (CS, CS)   block-diagonal additive causal mask
ROW_SEL   = ROW_CMASK + CS       # (CB*T_MEL, TN) 0/1 frame-selection mask
N_ROWS    = ROW_SEL + CB * T_MEL # 352 rows (CB=2, ~176 KiB) / 312 rows (CB=1)


# ------------------------------------ kernel ----------------------------------------
def _univoice_flow_kernel(
    act_ref,        # VMEM (CB, ACT_ROWS, TN) per-example packed activations
    p_ref,          # VMEM (N_ROWS, TN)       packed weights / biases / masks
    vpred_ref,      # out VMEM (CB, 1, TN)    predicted velocity (flat, lane-dense)
):
    f32 = jnp.float32
    bf16 = jnp.bfloat16

    # LN/bias block loaded once, sliced in-register.
    vec = p_ref[ROW_VEC:ROW_VEC + 8, :]                            # (8, TN)
    sel_full = p_ref[ROW_SEL:ROW_SEL + CB * T_MEL, :]              # (CB*T_MEL, TN)

    # ---- flow-matching interpolant + per-example rows, assembled in vregs ----
    xt_parts, temb_parts, text_parts = [], [], []
    for c in range(CB):                                            # CB is a static int
        x0 = act_ref[c, ROW_A_X0:ROW_A_X0 + 1, :]                  # (1, TN)
        x1 = act_ref[c, ROW_A_X1:ROW_A_X1 + 1, :]
        tt = act_ref[c, ROW_A_T:ROW_A_T + 1, :]                    # t broadcast row
        xt = (1.0 - tt) * x0 + tt * x1                             # interpolant, flat
        xt_parts.append(jnp.broadcast_to(xt, (T_MEL, TN)))
        temb_parts.append(jnp.broadcast_to(
            act_ref[c, ROW_A_TEMB:ROW_A_TEMB + 1, 0:D], (T_MEL, D)))
        text_parts.append(act_ref[c, ROW_A_TEXT:ROW_A_TEXT + S_TEXT, 0:D])

    xt_rows = jnp.concatenate(xt_parts, axis=0) * sel_full          # (CB*T_MEL, TN)

    # frame-wise mel-in projection, done in the flat layout:
    #   mel_tok[f] = xt[f*N:(f+1)*N] @ w_mel_in == (bcast(xt)*sel) @ tile(w_mel_in)
    mel_tok = jnp.dot(xt_rows.astype(bf16),
                      p_ref[ROW_W_IN:ROW_W_IN + TN, 0:D].astype(bf16),
                      preferred_element_type=f32)                   # (CB*T_MEL, D)
    mel_tok = mel_tok + jnp.concatenate(temb_parts, axis=0)         # timestep cond.

    # multimodal sequence [text ; speech] per example, stacked along sublanes
    h_parts = []
    for c in range(CB):
        h_parts.append(text_parts[c])                               # (S_TEXT, D)
        h_parts.append(mel_tok[c * T_MEL:(c + 1) * T_MEL, :])       # (T_MEL, D)
    h = jnp.concatenate(h_parts, axis=0)                            # (CS, D)

    def layer_norm(x, g, beta):
        mu = jnp.mean(x, axis=-1, keepdims=True)
        d = x - mu
        var = jnp.mean(d * d, axis=-1, keepdims=True)
        return d * lax.rsqrt(var + 1e-5) * g + beta

    # lane-packed weight panels, loaded once and sliced in-register
    wblk = p_ref[ROW_WBLK:ROW_WBLK + D, :]                          # (D, 128)
    wqk = wblk[:, 0:D].astype(bf16)                                 # Wq @ Wk^T (folded)
    wvo = wblk[:, D:2 * D].astype(bf16)                             # Wv @ Wo   (folded)
    w1  = wblk[:, 2 * D:2 * D + D_FF].astype(bf16)

    # ---- causal self-attention (single head, pre-LN), block-diagonal over examples --
    hn = layer_norm(h, vec[0:1, 0:D], vec[1:2, 0:D])
    hn_b = hn.astype(bf16)
    a = jnp.dot(hn_b, wqk, preferred_element_type=f32)              # (CS, D)
    # s = a @ hn^T without a materialized transpose: contract on dim 1 of both.
    s = lax.dot_general(a.astype(bf16), hn_b,
                        dimension_numbers=(((1,), (1,)), ((), ())),
                        preferred_element_type=f32) * (1.0 / (D ** 0.5))
    s = s + p_ref[ROW_CMASK:ROW_CMASK + CS, 0:CS]                   # additive causal mask
    s = s - jnp.max(s, axis=-1, keepdims=True)
    p = jnp.exp(s)
    p = p * pl.reciprocal(jnp.sum(p, axis=-1, keepdims=True), approx=True)
    ctx = jnp.dot(p.astype(bf16), hn_b, preferred_element_type=f32)  # (CS, D)
    h = h + jnp.dot(ctx.astype(bf16), wvo, preferred_element_type=f32)

    # ---- MLP ----
    hn2 = layer_norm(h, vec[2:3, 0:D], vec[3:4, 0:D])
    ff = jnp.dot(hn2.astype(bf16), w1, preferred_element_type=f32)   # (CS, D_FF)
    ff = jax.nn.gelu(ff + vec[4:5, 0:D_FF])
    w2 = p_ref[ROW_W2:ROW_W2 + D_FF, 0:D].astype(bf16)
    h = h + jnp.dot(ff.astype(bf16), w2, preferred_element_type=f32) + vec[5:6, 0:D]

    # ---- velocity head, produced directly in the flat (CB, TN) lane-dense layout ----
    #   big[r, 8g+m] = (h_mel @ w_out)[r, m]  (w_out tiled along lanes); frame-select
    #   mask + per-example reduce matrix collapse frames into the flat prediction.
    h_mel = jnp.concatenate(
        [h[c * SEQ + S_TEXT:(c + 1) * SEQ, :] for c in range(CB)], axis=0)  # (CB*T_MEL, D)
    big = jnp.dot(h_mel.astype(bf16), p_ref[ROW_W_OUT:ROW_W_OUT + D, :].astype(bf16),
                  preferred_element_type=f32)                        # (CB*T_MEL, TN)
    big = big * sel_full
    red = p_ref[ROW_RED:ROW_RED + CB, 0:CB * T_MEL]                  # (CB, CB*T_MEL) 0/1
    vpred = jnp.dot(red, big, preferred_element_type=f32)            # (CB, TN), exact select
    vpred = vpred + vec[6:7, :]                                      # flat output bias
    vpred_ref[...] = vpred[:, None, :]                               # full-width store


# -------------------------------- pallas_call wrapper --------------------------------
@jax.jit
def univoice_flow_loss(t, text_emb, x0_flat, x1_flat, temb, pslab):
    # Consolidate the small per-example inputs into one lane-dense activation slab
    # (one BlockSpec / one DMA per step instead of five narrow ones).
    act = jnp.zeros((B, ACT_ROWS, TN), jnp.float32)
    act = act.at[:, ROW_A_X0, :].set(x0_flat)
    act = act.at[:, ROW_A_X1, :].set(x1_flat)
    act = act.at[:, ROW_A_T, :].set(jnp.broadcast_to(t[:, None], (B, TN)))
    act = act.at[:, ROW_A_TEMB, 0:D].set(temb)
    act = act.at[:, ROW_A_TEXT:ROW_A_TEXT + S_TEXT, 0:D].set(text_emb)

    grid_spec = pltpu.PrefetchScalarGridSpec(
        num_scalar_prefetch=0,
        grid=(GRID,),
        in_specs=[
            pl.BlockSpec((CB, ACT_ROWS, TN), lambda g: (g, 0, 0)),   # activation slab
            pl.BlockSpec((N_ROWS, TN), lambda g: (0, 0)),            # packed constants
        ],
        out_specs=pl.BlockSpec((CB, 1, TN), lambda g: (g, 0, 0)),    # vpred (flat)
    )
    vpred3 = pl.pallas_call(
        _univoice_flow_kernel,
        out_shape=jax.ShapeDtypeStruct((B, 1, TN), jnp.float32),
        grid_spec=grid_spec,
        compiler_params=pltpu.CompilerParams(
            dimension_semantics=("parallel",),     # v7x: one example per TensorCore
            vmem_limit_bytes=8 * 1024 * 1024,      # actual footprint well under 1 MiB
        ),
    )(act, pslab)

    vpred = vpred3.reshape(B, TN)
    # flow-matching loss computed in the wrapper (no in-kernel scalar output)
    u = x1_flat - x0_flat
    err = vpred - u
    loss = jnp.mean(jnp.sum(err * err, axis=-1) / float(TN))
    return loss, vpred.reshape(B, T_MEL, N_MELS)


# --------------------------- parameter / constant packing ----------------------------
def _pack_param_slab(p):
    """Pack all weights, bias/LN vectors and static masks into one (N_ROWS, TN) slab."""
    slab = jnp.zeros((N_ROWS, TN), jnp.float32)

    def put(s, row, col, arr):
        arr = jnp.asarray(arr, jnp.float32)
        return s.at[row:row + arr.shape[0], col:col + arr.shape[1]].set(arr)

    slab = put(slab, ROW_W_IN, 0, jnp.tile(p["w_mel_in"], (T_MEL, 1)))        # (TN, D)
    slab = put(slab, ROW_WBLK, 0, p["wq"] @ p["wk"].T)                        # (D, D)
    slab = put(slab, ROW_WBLK, D, p["wv"] @ p["wo"])                          # (D, D)
    slab = put(slab, ROW_WBLK, 2 * D, p["w1"])                                # (D, D_FF)
    slab = put(slab, ROW_W2, 0, p["w2"])                                      # (D_FF, D)
    slab = put(slab, ROW_W_OUT, 0, jnp.tile(p["w_out"], (1, T_MEL)))          # (D, TN)
    slab = put(slab, ROW_VEC + 0, 0, p["ln1_g"])
    slab = put(slab, ROW_VEC + 1, 0, p["ln1_b"])
    slab = put(slab, ROW_VEC + 2, 0, p["ln2_g"])
    slab = put(slab, ROW_VEC + 3, 0, p["ln2_b"])
    slab = put(slab, ROW_VEC + 4, 0, p["b1"])
    slab = put(slab, ROW_VEC + 5, 0, p["b2"])
    slab = put(slab, ROW_VEC + 6, 0, jnp.tile(p["b_out"], (1, T_MEL)))        # (1, TN)

    # per-example frame-reduce matrix: red[c, r] = 1 iff frame-row r belongs to example c
    rows = jnp.arange(CB * T_MEL)
    ex = jnp.arange(CB)
    red = (rows[None, :] // T_MEL == ex[:, None]).astype(jnp.float32)         # (CB, CB*T_MEL)
    slab = put(slab, ROW_RED, 0, red)

    # block-diagonal additive causal mask over the fused [text ; speech] sequences
    idx = jnp.arange(CS)
    same_ex = (idx[:, None] // SEQ) == (idx[None, :] // SEQ)
    causal = (idx[:, None] % SEQ) >= (idx[None, :] % SEQ)
    cmask = jnp.where(same_ex & causal, 0.0, -1e30).astype(jnp.float32)       # (CS, CS)
    slab = put(slab, ROW_CMASK, 0, cmask)

    # frame-selection mask: sel[f, c] = 1 iff lane c belongs to mel frame f (tiled CB x)
    lane = jnp.arange(TN)
    frame = jnp.arange(T_MEL)
    sel = (lane[None, :] // N_MELS == frame[:, None]).astype(jnp.float32)     # (T_MEL, TN)
    slab = put(slab, ROW_SEL, 0, jnp.tile(sel, (CB, 1)))                      # (CB*T_MEL, TN)
    return slab


# ----------------------------------- UniVoice ----------------------------------------
class UniVoicePallas:
    """Synthetic UniVoice: token/mel embedding glue + Pallas flow-matching transformer."""

    def __init__(self, cfg_scale=4.0, seed=0):
        self.cfg_scale = cfg_scale
        key = jax.random.PRNGKey(seed)
        ks = jax.random.split(key, 16)
        init = lambda k, shape, scale: (scale * jax.random.normal(k, shape)).astype(jnp.float32)
        self.embed = init(ks[0], (VOCAB, D), 0.02)             # resized token embedding table
        self.params = {
            "w_mel_in": init(ks[1], (N_MELS, D), 0.1),
            "wq": init(ks[2], (D, D), 0.05),
            "wk": init(ks[3], (D, D), 0.05),
            "wv": init(ks[4], (D, D), 0.05),
            "wo": init(ks[5], (D, D), 0.05),
            "ln1_g": jnp.ones((1, D), jnp.float32),
            "ln1_b": jnp.zeros((1, D), jnp.float32),
            "ln2_g": jnp.ones((1, D), jnp.float32),
            "ln2_b": jnp.zeros((1, D), jnp.float32),
            "w1": init(ks[6], (D, D_FF), 0.05),
            "b1": jnp.zeros((1, D_FF), jnp.float32),
            "w2": init(ks[7], (D_FF, D), 0.05),
            "b2": jnp.zeros((1, D), jnp.float32),
            "w_out": init(ks[8], (D, N_MELS), 0.05),
            "b_out": jnp.zeros((1, N_MELS), jnp.float32),
        }
        # packed once at construction: all weights + LN/bias vectors + static masks
        self.param_slab = _pack_param_slab(self.params)

    @staticmethod
    def _timestep_embedding(t, dim):
        half = dim // 2
        freqs = jnp.exp(-jnp.log(10000.0) * jnp.arange(half, dtype=jnp.float32) / half)
        args = t[:, None] * freqs[None, :]
        return jnp.concatenate([jnp.cos(args), jnp.sin(args)], axis=-1)   # [B, dim]

    def forward(self, input_ids, attention_mask, labels, mel_spec, speechs,
                flags, target_len, text, wav_path):
        # TODO(synk): tokenizer setup / speech-token splicing / wav_path IO and the HF
        # checkpoint load have no Pallas equivalent; text conditioning is modeled with
        # plain token embeddings and full (causal) attention.
        del attention_mask, labels, speechs, flags, target_len, text, wav_path
        # flow-matching draws of (noise, time) — deterministic here
        k_noise, k_t = jax.random.split(jax.random.PRNGKey(1234))
        x1 = jnp.transpose(mel_spec, (0, 2, 1)).astype(jnp.float32)       # [B, T, n_mels]
        x0 = jax.random.normal(k_noise, x1.shape, jnp.float32)
        t = jax.random.uniform(k_t, (B,), jnp.float32)
        temb = self._timestep_embedding(t, D)                             # [B, D]
        text_emb = self.embed[input_ids].astype(jnp.float32)              # [B, S_TEXT, D]
        # lane-dense flat mel layout for the kernel
        x0_flat = x0.reshape(B, TN)
        x1_flat = x1.reshape(B, TN)
        loss, _vpred = univoice_flow_loss(t, text_emb, x0_flat, x1_flat, temb,
                                          self.param_slab)
        return {"loss": loss}


# ------------------------------------- main -------------------------------------------
if __name__ == "__main__":
    key = jax.random.PRNGKey(0)
    k_ids, k_mel = jax.random.split(key)
    input_ids = jax.random.randint(k_ids, (B, S_TEXT), 0, VOCAB, dtype=jnp.int32)
    attention_mask = jnp.ones((B, S_TEXT), jnp.int32)
    labels = input_ids
    mel_spec = jax.random.normal(k_mel, (B, N_MELS, T_MEL), jnp.float32)  # PyTorch [n_mels, T]
    speechs = None
    flags = jnp.ones((B,), jnp.int32)
    target_len = [T_MEL] * B
    text = ["synthetic caption"] * B
    wav_path = ["<in-memory>"] * B

    model = UniVoicePallas(cfg_scale=4.0)
    out = model.forward(input_ids, attention_mask, labels, mel_spec, speechs,
                        flags, target_len, text, wav_path)
    loss = jax.block_until_ready(out["loss"])
    assert bool(jnp.isfinite(loss)), "loss is not finite"
    print("KERNEL_OK")
</pallas_src>

<mosaic_0001>
module attributes {stable_mosaic.version = 11 : i64} {
  func.func @_univoice_flow_kernel(%arg0: i32, %arg1: memref<2x16x128xf32, #tpu.memory_space<vmem>>, %arg2: memref<352x128xf32, #tpu.memory_space<vmem>>, %arg3: memref<2x1x128xf32, #tpu.memory_space<vmem>>) attributes {dimension_semantics = [#tpu.dimension_semantics<parallel>], iteration_bounds = array<i64: 1>, scalar_prefetch = 0 : i64, scratch_operands = 0 : i64, tpu.core_type = #tpu.core_type<tc>, window_params = [{transform_indices = @transform_0, window_bounds = array<i64: 2, 16, 128>}, {pipeline_mode = #tpu.pipeline_mode<synchronous>, transform_indices = @transform_1, window_bounds = array<i64: 352, 128>}, {transform_indices = @transform_2, window_bounds = array<i64: 2, 1, 128>}]} {
    %c256 = arith.constant 256 : index
    %c0 = arith.constant 0 : index
    %0 = vector.load %arg2[%c256, %c0] : memref<352x128xf32, #tpu.memory_space<vmem>>, vector<8x128xf32>
    %c320 = arith.constant 320 : index
    %c0_0 = arith.constant 0 : index
    %1 = vector.load %arg2[%c320, %c0_0] : memref<352x128xf32, #tpu.memory_space<vmem>>, vector<32x128xf32>
    %c0_1 = arith.constant 0 : index
    %c0_2 = arith.constant 0 : index
    %c0_3 = arith.constant 0 : index
    %2 = vector.load %arg1[%c0_1, %c0_2, %c0_3] : memref<2x16x128xf32, #tpu.memory_space<vmem>>, vector<1x1x128xf32>
    %3 = vector.shape_cast %2 : vector<1x1x128xf32> to vector<1x128xf32>
    %c0_4 = arith.constant 0 : index
    %c1 = arith.constant 1 : index
    %c0_5 = arith.constant 0 : index
    %4 = vector.load %arg1[%c0_4, %c1, %c0_5] : memref<2x16x128xf32, #tpu.memory_space<vmem>>, vector<1x1x128xf32>
    %5 = vector.shape_cast %4 : vector<1x1x128xf32> to vector<1x128xf32>
    %c0_6 = arith.constant 0 : index
    %c2 = arith.constant 2 : index
    %c0_7 = arith.constant 0 : index
    %6 = vector.load %arg1[%c0_6, %c2, %c0_7] : memref<2x16x128xf32, #tpu.memory_space<vmem>>, vector<1x1x128xf32>
    %7 = vector.shape_cast %6 : vector<1x1x128xf32> to vector<1x128xf32>
    %cst = arith.constant 1.000000e+00 : f32
    %8 = vector.broadcast %cst : f32 to vector<1x128xf32>
    %9 = arith.subf %8, %7 : vector<1x128xf32>
    %10 = arith.mulf %9, %3 : vector<1x128xf32>
    %11 = arith.mulf %7, %5 : vector<1x128xf32>
    %12 = arith.addf %10, %11 : vector<1x128xf32>
    %13 = vector.shape_cast %12 : vector<1x128xf32> to vector<1x128xf32>
    %14 = vector.broadcast %13 : vector<1x128xf32> to vector<16x128xf32>
    %c0_8 = arith.constant 0 : index
    %c3 = arith.constant 3 : index
    %c0_9 = arith.constant 0 : index
    %15 = vector.load %arg1[%c0_8, %c3, %c0_9] : memref<2x16x128xf32, #tpu.memory_space<vmem>>, vector<1x1x32xf32>
    %16 = vector.shape_cast %15 : vector<1x1x32xf32> to vector<1x32xf32>
    %17 = vector.shape_cast %16 : vector<1x32xf32> to vector<1x32xf32>
    %18 = vector.broadcast %17 : vector<1x32xf32> to vector<16x32xf32>
    %c0_10 = arith.constant 0 : index
    %c8 = arith.constant 8 : index
    %c0_11 = arith.constant 0 : index
    %19 = vector.load %arg1[%c0_10, %c8, %c0_11] : memref<2x16x128xf32, #tpu.memory_space<vmem>>, vector<1x8x32xf32>
    %20 = vector.shape_cast %19 : vector<1x8x32xf32> to vector<8x32xf32>
    %c1_12 = arith.constant 1 : index
    %c0_13 = arith.constant 0 : index
    %c0_14 = arith.constant 0 : index
    %21 = vector.load %arg1[%c1_12, %c0_13, %c0_14] : memref<2x16x128xf32, #tpu.memory_space<vmem>>, vector<1x1x128xf32>
    %22 = vector.shape_cast %21 : vector<1x1x128xf32> to vector<1x128xf32>
    %c1_15 = arith.constant 1 : index
    %c1_16 = arith.constant 1 : index
    %c0_17 = arith.constant 0 : index
    %23 = vector.load %arg1[%c1_15, %c1_16, %c0_17] : memref<2x16x128xf32, #tpu.memory_space<vmem>>, vector<1x1x128xf32>
    %24 = vector.shape_cast %23 : vector<1x1x128xf32> to vector<1x128xf32>
    %c1_18 = arith.constant 1 : index
    %c2_19 = arith.constant 2 : index
    %c0_20 = arith.constant 0 : index
    %25 = vector.load %arg1[%c1_18, %c2_19, %c0_20] : memref<2x16x128xf32, #tpu.memory_space<vmem>>, vector<1x1x128xf32>
    %26 = vector.shape_cast %25 : vector<1x1x128xf32> to vector<1x128xf32>
    %cst_21 = arith.constant 1.000000e+00 : f32
    %27 = vector.broadcast %cst_21 : f32 to vector<1x128xf32>
    %28 = arith.subf %27, %26 : vector<1x128xf32>
    %29 = arith.mulf %28, %22 : vector<1x128xf32>
    %30 = arith.mulf %26, %24 : vector<1x128xf32>
    %31 = arith.addf %29, %30 : vector<1x128xf32>
    %32 = vector.shape_cast %31 : vector<1x128xf32> to vector<1x128xf32>
    %33 = vector.broadcast %32 : vector<1x128xf32> to vector<16x128xf32>
    %c1_22 = arith.constant 1 : index
    %c3_23 = arith.constant 3 : index
    %c0_24 = arith.constant 0 : index
    %34 = vector.load %arg1[%c1_22, %c3_23, %c0_24] : memref<2x16x128xf32, #tpu.memory_space<vmem>>, vector<1x1x32xf32>
    %35 = vector.shape_cast %34 : vector<1x1x32xf32> to vector<1x32xf32>
    %36 = vector.shape_cast %35 : vector<1x32xf32> to vector<1x32xf32>
    %37 = vector.broadcast %36 : vector<1x32xf32> to vector<16x32xf32>
    %c1_25 = arith.constant 1 : index
    %c8_26 = arith.constant 8 : index
    %c0_27 = arith.constant 0 : index
    %38 = vector.load %arg1[%c1_25, %c8_26, %c0_27] : memref<2x16x128xf32, #tpu.memory_space<vmem>>, vector<1x8x32xf32>
    %39 = vector.shape_cast %38 : vector<1x8x32xf32> to vector<8x32xf32>
    %40 = tpu.concatenate %14, %33 in 0 : vector<16x128xf32>, vector<16x128xf32> -> vector<32x128xf32>
    %41 = arith.mulf %40, %1 : vector<32x128xf32>
    %42 = arith.truncf %41 : vector<32x128xf32> to vector<32x128xbf16>
    %c0_28 = arith.constant 0 : index
    %c0_29 = arith.constant 0 : index
    %43 = vector.load %arg2[%c0_28, %c0_29] : memref<352x128xf32, #tpu.memory_space<vmem>>, vector<128x32xf32>
    %44 = arith.truncf %43 : vector<128x32xf32> to vector<128x32xbf16>
    %cst_30 = arith.constant dense<0.000000e+00> : vector<32x32xf32>
    %45 = tpu.matmul %42, %44, %cst_30 {dimension_numbers = #tpu.dot_dimension_numbers<[1], [0], [0], [1], [0, 0, 1, 1], [], []>} : vector<32x128xbf16>, vector<128x32xbf16>, vector<32x32xf32> -> vector<32x32xf32>
    %46 = tpu.concatenate %18, %37 in 0 : vector<16x32xf32>, vector<16x32xf32> -> vector<32x32xf32>
    %47 = arith.addf %45, %46 : vector<32x32xf32>
    %48 = vector.extract_strided_slice %47 {offsets = [0, 0], sizes = [16, 32], strides = [1, 1]} : vector<32x32xf32> to vector<16x32xf32>
    %49 = vector.extract_strided_slice %47 {offsets = [16, 0], sizes = [16, 32], strides = [1, 1]} : vector<32x32xf32> to vector<16x32xf32>
    %50 = tpu.concatenate %20, %48, %39, %49 in 0 : vector<8x32xf32>, vector<16x32xf32>, vector<8x32xf32>, vector<16x32xf32> -> vector<48x32xf32>
    %c128 = arith.constant 128 : index
    %c0_31 = arith.constant 0 : index
    %51 = vector.load %arg2[%c128, %c0_31] : memref<352x128xf32, #tpu.memory_space<vmem>>, vector<32x128xf32>
    %52 = vector.extract_strided_slice %51 {offsets = [0, 0], sizes = [32, 32], strides = [1, 1]} : vector<32x128xf32> to vector<32x32xf32>
    %53 = arith.truncf %52 : vector<32x32xf32> to vector<32x32xbf16>
    %54 = vector.extract_strided_slice %51 {offsets = [0, 32], sizes = [32, 32], strides = [1, 1]} : vector<32x128xf32> to vector<32x32xf32>
    %55 = arith.truncf %54 : vector<32x32xf32> to vector<32x32xbf16>
    %56 = vector.extract_strided_slice %51 {offsets = [0, 64], sizes = [32, 64], strides = [1, 1]} : vector<32x128xf32> to vector<32x64xf32>
    %57 = arith.truncf %56 : vector<32x64xf32> to vector<32x64xbf16>
    %58 = vector.extract_strided_slice %0 {offsets = [0, 0], sizes = [1, 32], strides = [1, 1]} : vector<8x128xf32> to vector<1x32xf32>
    %59 = vector.extract_strided_slice %0 {offsets = [1, 0], sizes = [1, 32], strides = [1, 1]} : vector<8x128xf32> to vector<1x32xf32>
    %cst_32 = arith.constant dense<0.000000e+00> : vector<48xf32>
    %60 = vector.multi_reduction <add>, %50, %cst_32 [1] : vector<48x32xf32> to vector<48xf32>
    %61 = vector.shape_cast %60 : vector<48xf32> to vector<48x1xf32>
    %cst_33 = arith.constant 3.200000e+01 : f32
    %62 = vector.broadcast %cst_33 : f32 to vector<48x1xf32>
    %63 = arith.divf %61, %62 : vector<48x1xf32>
    %64 = vector.broadcast %63 : vector<48x1xf32> to vector<48x32xf32>
    %65 = arith.subf %50, %64 : vector<48x32xf32>
    %66 = arith.mulf %65, %65 : vector<48x32xf32>
    %cst_34 = arith.constant dense<0.000000e+00> : vector<48xf32>
    %67 = vector.multi_reduction <add>, %66, %cst_34 [1] : vector<48x32xf32> to vector<48xf32>
    %68 = vector.shape_cast %67 : vector<48xf32> to vector<48x1xf32>
    %cst_35 = arith.constant 3.200000e+01 : f32
    %69 = vector.broadcast %cst_35 : f32 to vector<48x1xf32>
    %70 = arith.divf %68, %69 : vector<48x1xf32>
    %cst_36 = arith.constant 9.99999974E-6 : f32
    %71 = vector.broadcast %cst_36 : f32 to vector<48x1xf32>
    %72 = arith.addf %70, %71 : vector<48x1xf32>
    %73 = math.rsqrt %72 : vector<48x1xf32>
    %74 = vector.broadcast %73 : vector<48x1xf32> to vector<48x32xf32>
    %75 = arith.mulf %65, %74 : vector<48x32xf32>
    %76 = vector.broadcast %58 : vector<1x32xf32> to vector<48x32xf32>
    %77 = arith.mulf %75, %76 : vector<48x32xf32>
    %78 = vector.broadcast %59 : vector<1x32xf32> to vector<48x32xf32>
    %79 = arith.addf %77, %78 : vector<48x32xf32>
    %80 = arith.truncf %79 : vector<48x32xf32> to vector<48x32xbf16>
    %cst_37 = arith.constant dense<0.000000e+00> : vector<48x32xf32>
    %81 = tpu.matmul %80, %53, %cst_37 {dimension_numbers = #tpu.dot_dimension_numbers<[1], [0], [0], [1], [0, 0, 1, 1], [], []>} : vector<48x32xbf16>, vector<32x32xbf16>, vector<48x32xf32> -> vector<48x32xf32>
    %82 = arith.truncf %81 : vector<48x32xf32> to vector<48x32xbf16>
    %cst_38 = arith.constant dense<0.000000e+00> : vector<48x48xf32>
    %83 = tpu.matmul %82, %80, %cst_38 {dimension_numbers = #tpu.dot_dimension_numbers<[1], [1], [0], [0], [0, 0, 1, 0], [], []>} : vector<48x32xbf16>, vector<48x32xbf16>, vector<48x48xf32> -> vector<48x48xf32>
    %cst_39 = arith.constant 0.176776692 : f32
    %84 = vector.broadcast %cst_39 : f32 to vector<48x48xf32>
    %85 = arith.mulf %83, %84 : vector<48x48xf32>
    %c272 = arith.constant 272 : index
    %c0_40 = arith.constant 0 : index
    %86 = vector.load %arg2[%c272, %c0_40] : memref<352x128xf32, #tpu.memory_space<vmem>>, vector<48x48xf32>
    %87 = arith.addf %85, %86 : vector<48x48xf32>
    %cst_41 = arith.constant dense<0xFF800000> : vector<48xf32>
    %88 = vector.multi_reduction <maximumf>, %87, %cst_41 [1] : vector<48x48xf32> to vector<48xf32>
    %89 = vector.shape_cast %88 : vector<48xf32> to vector<48x1xf32>
    %90 = vector.broadcast %89 : vector<48x1xf32> to vector<48x48xf32>
    %91 = arith.subf %87, %90 : vector<48x48xf32>
    %92 = math.exp %91 : vector<48x48xf32>
    %cst_42 = arith.constant dense<0.000000e+00> : vector<48xf32>
    %93 = vector.multi_reduction <add>, %92, %cst_42 [1] : vector<48x48xf32> to vector<48xf32>
    %94 = vector.shape_cast %93 : vector<48xf32> to vector<48x1xf32>
    %95 = tpu.reciprocal %94 {approx = true} : vector<48x1xf32> -> vector<48x1xf32>
    %96 = vector.broadcast %95 : vector<48x1xf32> to vector<48x48xf32>
    %97 = arith.mulf %92, %96 : vector<48x48xf32>
    %98 = arith.truncf %97 : vector<48x48xf32> to vector<48x48xbf16>
    %cst_43 = arith.constant dense<0.000000e+00> : vector<48x32xf32>
    %99 = tpu.matmul %98, %80, %cst_43 {dimension_numbers = #tpu.dot_dimension_numbers<[1], [0], [0], [1], [0, 0, 1, 1], [], []>} : vector<48x48xbf16>, vector<48x32xbf16>, vector<48x32xf32> -> vector<48x32xf32>
    %100 = arith.truncf %99 : vector<48x32xf32> to vector<48x32xbf16>
    %cst_44 = arith.constant dense<0.000000e+00> : vector<48x32xf32>
    %101 = tpu.matmul %100, %55, %cst_44 {dimension_numbers = #tpu.dot_dimension_numbers<[1], [0], [0], [1], [0, 0, 1, 1], [], []>} : vector<48x32xbf16>, vector<32x32xbf16>, vector<48x32xf32> -> vector<48x32xf32>
    %102 = arith.addf %50, %101 : vector<48x32xf32>
    %103 = vector.extract_strided_slice %0 {offsets = [2, 0], sizes = [1, 32], strides = [1, 1]} : vector<8x128xf32> to vector<1x32xf32>
    %104 = vector.extract_strided_slice %0 {offsets = [3, 0], sizes = [1, 32], strides = [1, 1]} : vector<8x128xf32> to vector<1x32xf32>
    %cst_45 = arith.constant dense<0.000000e+00> : vector<48xf32>
    %105 = vector.multi_reduction <add>, %102, %cst_45 [1] : vector<48x32xf32> to vector<48xf32>
    %106 = vector.shape_cast %105 : vector<48xf32> to vector<48x1xf32>
    %cst_46 = arith.constant 3.200000e+01 : f32
    %107 = vector.broadcast %cst_46 : f32 to vector<48x1xf32>
    %108 = arith.divf %106, %107 : vector<48x1xf32>
    %109 = vector.broadcast %108 : vector<48x1xf32> to vector<48x32xf32>
    %110 = arith.subf %102, %109 : vector<48x32xf32>
    %111 = arith.mulf %110, %110 : vector<48x32xf32>
    %cst_47 = arith.constant dense<0.000000e+00> : vector<48xf32>
    %112 = vector.multi_reduction <add>, %111, %cst_47 [1] : vector<48x32xf32> to vector<48xf32>
    %113 = vector.shape_cast %112 : vector<48xf32> to vector<48x1xf32>
    %cst_48 = arith.constant 3.200000e+01 : f32
    %114 = vector.broadcast %cst_48 : f32 to vector<48x1xf32>
    %115 = arith.divf %113, %114 : vector<48x1xf32>
    %cst_49 = arith.constant 9.99999974E-6 : f32
    %116 = vector.broadcast %cst_49 : f32 to vector<48x1xf32>
    %117 = arith.addf %115, %116 : vector<48x1xf32>
    %118 = math.rsqrt %117 : vector<48x1xf32>
    %119 = vector.broadcast %118 : vector<48x1xf32> to vector<48x32xf32>
    %120 = arith.mulf %110, %119 : vector<48x32xf32>
    %121 = vector.broadcast %103 : vector<1x32xf32> to vector<48x32xf32>
    %122 = arith.mulf %120, %121 : vector<48x32xf32>
    %123 = vector.broadcast %104 : vector<1x32xf32> to vector<48x32xf32>
    %124 = arith.addf %122, %123 : vector<48x32xf32>
    %125 = arith.truncf %124 : vector<48x32xf32> to vector<48x32xbf16>
    %cst_50 = arith.constant dense<0.000000e+00> : vector<48x64xf32>
    %126 = tpu.matmul %125, %57, %cst_50 {dimension_numbers = #tpu.dot_dimension_numbers<[1], [0], [0], [1], [0, 0, 1, 1], [], []>} : vector<48x32xbf16>, vector<32x64xbf16>, vector<48x64xf32> -> vector<48x64xf32>
    %127 = vector.extract_strided_slice %0 {offsets = [4, 0], sizes = [1, 64], strides = [1, 1]} : vector<8x128xf32> to vector<1x64xf32>
    %128 = vector.broadcast %127 : vector<1x64xf32> to vector<48x64xf32>
    %129 = arith.addf %126, %128 : vector<48x64xf32>
    %130 = arith.mulf %129, %129 : vector<48x64xf32>
    %131 = arith.mulf %129, %130 : vector<48x64xf32>
    %cst_51 = arith.constant 4.471500e-02 : f32
    %132 = vector.broadcast %cst_51 : f32 to vector<48x64xf32>
    %133 = arith.mulf %132, %131 : vector<48x64xf32>
    %134 = arith.addf %129, %133 : vector<48x64xf32>
    %cst_52 = arith.constant 0.797884583 : f32
    %135 = vector.broadcast %cst_52 : f32 to vector<48x64xf32>
    %136 = arith.mulf %135, %134 : vector<48x64xf32>
    %137 = math.tanh %136 : vector<48x64xf32>
    %cst_53 = arith.constant 1.000000e+00 : f32
    %138 = vector.broadcast %cst_53 : f32 to vector<48x64xf32>
    %139 = arith.addf %138, %137 : vector<48x64xf32>
    %cst_54 = arith.constant 5.000000e-01 : f32
    %140 = vector.broadcast %cst_54 : f32 to vector<48x64xf32>
    %141 = arith.mulf %140, %139 : vector<48x64xf32>
    %142 = arith.mulf %129, %141 : vector<48x64xf32>
    %c160 = arith.constant 160 : index
    %c0_55 = arith.constant 0 : index
    %143 = vector.load %arg2[%c160, %c0_55] : memref<352x128xf32, #tpu.memory_space<vmem>>, vector<64x32xf32>
    %144 = arith.truncf %143 : vector<64x32xf32> to vector<64x32xbf16>
    %145 = arith.truncf %142 : vector<48x64xf32> to vector<48x64xbf16>
    %cst_56 = arith.constant dense<0.000000e+00> : vector<48x32xf32>
    %146 = tpu.matmul %145, %144, %cst_56 {dimension_numbers = #tpu.dot_dimension_numbers<[1], [0], [0], [1], [0, 0, 1, 1], [], []>} : vector<48x64xbf16>, vector<64x32xbf16>, vector<48x32xf32> -> vector<48x32xf32>
    %147 = arith.addf %102, %146 : vector<48x32xf32>
    %148 = vector.extract_strided_slice %0 {offsets = [5, 0], sizes = [1, 32], strides = [1, 1]} : vector<8x128xf32> to vector<1x32xf32>
    %149 = vector.broadcast %148 : vector<1x32xf32> to vector<48x32xf32>
    %150 = arith.addf %147, %149 : vector<48x32xf32>
    %151 = vector.extract_strided_slice %150 {offsets = [8, 0], sizes = [16, 32], strides = [1, 1]} : vector<48x32xf32> to vector<16x32xf32>
    %152 = vector.extract_strided_slice %150 {offsets = [32, 0], sizes = [16, 32], strides = [1, 1]} : vector<48x32xf32> to vector<16x32xf32>
    %153 = tpu.concatenate %151, %152 in 0 : vector<16x32xf32>, vector<16x32xf32> -> vector<32x32xf32>
    %154 = arith.truncf %153 : vector<32x32xf32> to vector<32x32xbf16>
    %c224 = arith.constant 224 : index
    %c0_57 = arith.constant 0 : index
    %155 = vector.load %arg2[%c224, %c0_57] : memref<352x128xf32, #tpu.memory_space<vmem>>, vector<32x128xf32>
    %156 = arith.truncf %155 : vector<32x128xf32> to vector<32x128xbf16>
    %cst_58 = arith.constant dense<0.000000e+00> : vector<32x128xf32>
    %157 = tpu.matmul %154, %156, %cst_58 {dimension_numbers = #tpu.dot_dimension_numbers<[1], [0], [0], [1], [0, 0, 1, 1], [], []>} : vector<32x32xbf16>, vector<32x128xbf16>, vector<32x128xf32> -> vector<32x128xf32>
    %158 = arith.mulf %157, %1 : vector<32x128xf32>
    %c264 = arith.constant 264 : index
    %c0_59 = arith.constant 0 : index
    %159 = vector.load %arg2[%c264, %c0_59] : memref<352x128xf32, #tpu.memory_space<vmem>>, vector<2x32xf32>
    %cst_60 = arith.constant dense<0.000000e+00> : vector<2x128xf32>
    %160 = tpu.matmul %159, %158, %cst_60 {dimension_numbers = #tpu.dot_dimension_numbers<[1], [0], [0], [1], [0, 0, 1, 1], [], []>} : vector<2x32xf32>, vector<32x128xf32>, vector<2x128xf32> -> vector<2x128xf32>
    %161 = vector.extract_strided_slice %0 {offsets = [6, 0], sizes = [1, 128], strides = [1, 1]} : vector<8x128xf32> to vector<1x128xf32>
    %162 = vector.broadcast %161 : vector<1x128xf32> to vector<2x128xf32>
    %163 = arith.addf %160, %162 : vector<2x128xf32>
    %164 = vector.shape_cast %163 : vector<2x128xf32> to vector<2x1x128xf32>
    %c0_61 = arith.constant 0 : index
    %c0_62 = arith.constant 0 : index
    %c0_63 = arith.constant 0 : index
    %165 = vector.load %arg3[%c0_61, %c0_62, %c0_63] : memref<2x1x128xf32, #tpu.memory_space<vmem>>, vector<2x1x128xf32>
    tpu.vector_store %arg3[%c0_61, %c0_62, %c0_63], %164 {strides = array<i32>} : memref<2x1x128xf32, #tpu.memory_space<vmem>>, vector<2x1x128xf32>,
    return
  }
  func.func @transform_0(%arg0: i32) -> (i32, i32, i32) {
    %c0_i32 = arith.constant 0 : i32
    %c0_i32_0 = arith.constant 0 : i32
    %c0_i32_1 = arith.constant 0 : i32
    return %arg0, %c0_i32, %c0_i32_0 : i32, i32, i32
  }
  func.func @transform_1(%arg0: i32) -> (i32, i32) {
    %c0_i32 = arith.constant 0 : i32
    %c0_i32_0 = arith.constant 0 : i32
    %c0_i32_1 = arith.constant 0 : i32
    return %c0_i32, %c0_i32_0 : i32, i32
  }
  func.func @transform_2(%arg0: i32) -> (i32, i32, i32) {
    %c0_i32 = arith.constant 0 : i32
    %c0_i32_0 = arith.constant 0 : i32
    %c0_i32_1 = arith.constant 0 : i32
    return %arg0, %c0_i32, %c0_i32_0 : i32, i32, i32
  }
}

</mosaic_0001>

<bundles_post_ra>
// kernel: univoice_flow_loss.1
= control target key start
LH: loop header
LB: loop body
LE: loop exit
PB: predicated region body
PF: predicated region fallthrough
CT: control target
= control target key end

     0   :  { %7 = vsyncpa [#allocation3], 0  ;;  %s1456_s9 = smov [#allocation2]   ;;  %s1775_s0 = inlined_call_operand.vmem [shape: f32[2,16,128], index: 0, kind: input, shape index: {}]   ;;  %s1776_s1 = inlined_call_operand.hbm [shape: f32[352,128], index: 1, kind: input, shape index: {}]   ;;  %s1777_s2 = inlined_call_operand.vmem [shape: f32[2,1,128], index: 2, kind: output, shape index: {}]  }
   0x1   :  { %s15_s10 = sshll.u32 %s1456_s9, 4  ;;  %s1432_s13 = scalar_lea.hbm %s1776_s1, 5632  ;;  %s16_s10 = int_to_ptr.vmem [resolvable:$true] %s15_s10 }
   0x2   :  { %p1433_p0 = scmp.ne.s32.totalorder %s1776_s1, %s1432_s13  ;;  %p1436_p1 = scmp.lt.u32.totalorder %s1432_s13, %s1776_s1 }
   0x4   :  { %p1438_p2 = pnand %p1436_p1, %p1433_p0 }
   0x6   :  { %1441 = shalt.err (!%p1438_p2)
}
   0x7   :  { %s1442_s18 = scalar_lea.vmem %s16_s10, 5632  ;;  %p1447_p4 = scmp.lt.s32.totalorder %s16_s10, %s16_s10 }
   0x8   :  { %p1443_p3 = scmp.ne.s32.totalorder %s16_s10, %s1442_s18  ;;  %p1448_p5 = scmp.lt.s32.totalorder %s1442_s18, %s1442_s18 }
   0xa   :  { %p1449_p6 = por %p1448_p5, %p1447_p4 }
   0xc   :  { %p1450_p7 = pnand %p1449_p6, %p1443_p3 }
   0xe   :  { %1453 = shalt.err (!%p1450_p7)
}
   0xf   :  { %s1457_s19 = smov 128   ;;  %s1458_s20 = smov 8  }
  0x10   :  { %21 = dma.hbm_to_vmem [thread:$0]  %s1776_s1, 5632, %s16_s10, [#allocation3], %s1457_s19, %s1457_s19, %s1458_s20  }
  0x11   :  { %1454 = dma.done.wait [#allocation3], 5632  }
  0x12   :  { %1455 = vsyncadd [#allocation3], 4294961664  ;;  %v72_v0 = vld [vmem:[#allocation2] sm:$0xff]  ;;  %v73_v1 = vld [vmem:[#allocation2 + $0x8] sm:$0xff]  ;;  %v38_v8 = vlaneseq  ;;  %vm151_vm0 = vcmask 261120   ;;  %vm1460_vm1 = vmmov 0  }
  0x13   :  { %v74_v2 = vld [vmem:[#allocation2 + $0x10] sm:$0xff]  ;;  %v88_v3 = vpack.c.bf16 %v73_v1, %v72_v0  ;;  %v75_v4 = vld [vmem:[#allocation2 + $0x18] sm:$0xff]  ;;  %v76_v6 = vld [vmem:[#allocation2 + $0x20] sm:$0xff]  ;;  %vm407_vm2 = vcmask 392192   ;;  %s1462_s14 = smov 64   ;;  %vm872_vm3 = vcmask 523264  }
  0x14   :  { %v89_v5 = vpack.c.bf16 %v75_v4, %v74_v2  ;;  %v77_v7 = vld [vmem:[#allocation2 + $0x28] sm:$0xff]  ;;  %v78_v10 = vld [vmem:[#allocation2 + $0x30] sm:$0xff]  ;;  %v79_v11 = vld [vmem:[#allocation2 + $0x38] sm:$0xff]  ;;  %v1495_v13 = vshrl.u32 %v38_v8, 7 }
  0x15   :  { %1209 = vmatprep.subr.bf16.mxu0 %v88_v3  ;;  %v90_v9 = vpack.c.bf16 %v77_v7, %v76_v6  ;;  %v32_v12 = vld [vmem:[%s1775_s0 + $0x1] sm:$0x1]  ;;  %v31_v14 = vld [vmem:[%s1775_s0] sm:$0x1]  ;;  %v33_v15 = vld [vmem:[%s1775_s0 + $0x2] sm:$0x1]  ;;  %v91_v19 = vpack.c.bf16 %v79_v11, %v78_v10 }
  0x16   :  { %1210 = vmatpush3.bf16.msra.mxu0 %v88_v3  ;;  %v34_v16 = vsub.f32 1.0, %v33_v15  ;;  %v36_v17 = vmul.f32 %v33_v15, %v32_v12  ;;  %v1506_v18 = vld [vmem:[%s1775_s0 + $0x8] sm:$0xff]  ;;  %v1129_v20 = vld [vmem:[%s1775_s0 + $0x12] sm:$0x1]  ;;  %v80_v22 = vld [vmem:[#allocation2 + $0x40] sm:$0xff]  ;;  %v1514_v25 = vsub.s32 0, %v1495_v13 }
  0x17   :  { %1211 = vmatprep.subr.bf16.mxu0 %v89_v5  ;;  %v152_v21 = vsel %vm151_vm0, %v1506_v18, 0.0  ;;  %v81_v23 = vld [vmem:[#allocation2 + $0x48] sm:$0xff]  ;;  %v52_v26 = vsub.f32 1.0, %v1129_v20  ;;  %v1127_v28 = vld [vmem:[%s1775_s0 + $0x10] sm:$0x1]  ;;  %v27_v31 = vld [vmem:[#allocation2 + $0x140] sm:$0xff] }
  0x18   :  { %v35_v24 = vmul.f32 %v34_v16, %v31_v14  ;;  %153 = vadd.xlane.f32.xlu0 %v152_v21  ;;  %v1128_v29 = vld [vmem:[%s1775_s0 + $0x11] sm:$0x1]  ;;  %v92_v30 = vpack.c.bf16 %v81_v23, %v80_v22  ;;  %v28_v32 = vld [vmem:[#allocation2 + $0x148] sm:$0xff]  ;;  %v83_v34 = vld [vmem:[#allocation2 + $0x58] sm:$0xff] }
  0x19   :  { %v82_v33 = vld [vmem:[#allocation2 + $0x50] sm:$0xff]  ;;  %v53_v36 = vmul.f32 %v1127_v28, %v52_v26  ;;  %v54_v37 = vmul.f32 %v1129_v20, %v1128_v29  ;;  %v84_v41 = vld [vmem:[#allocation2 + $0x60] sm:$0xff]  ;;  %v85_v42 = vld [vmem:[#allocation2 + $0x68] sm:$0xff] }
  0x1a   :  { %1212 = vmatpush3.bf16.msra.mxu0 %v89_v5  ;;  %v37_v27 = vadd.f32 %v36_v17, %v35_v24  ;;  %v93_v40 = vpack.c.bf16 %v83_v34, %v82_v33  ;;  %v94_v45 = vpack.c.bf16 %v85_v42, %v84_v41  ;;  %v86_v46 = vld [vmem:[#allocation2 + $0x70] sm:$0xff]  ;;  %v87_v47 = vld [vmem:[#allocation2 + $0x78] sm:$0xff]  ;;  %v1126_v57 = vld [vmem:[%s1775_s0 + $0x3] ss:$0 sm:$0xff] }
  0x1b   :  { %1213 = vmatprep.subr.bf16.mxu0 %v90_v9  ;;  %v55_v44 = vadd.f32 %v54_v37, %v53_v36  ;;  %v29_v49 = vld [vmem:[#allocation2 + $0x150] sm:$0xff]  ;;  %v30_v50 = vld [vmem:[#allocation2 + $0x158] sm:$0xff]  ;;  %v95_v51 = vpack.c.bf16 %v87_v47, %v86_v46  ;;  %v146_v41 = vld [vmem:[#allocation2 + $0x88] sm:$0xff] }
  0x1c   :  { %v41_v35 = vrot.slane %v37_v27, %v1514_v25  ;;  %v1131_v59 = vld [vmem:[%s1775_s0 + $0x13] ss:$0 sm:$0xff]  ;;  %v1544_v4 = vld [vmem:[%s1775_s0 + $0x18] sm:$0xff]  ;;  %s1461_s0 = smov 96  }
  0x1d   :  { %v59_v48 = vrot.slane %v55_v44, %v1514_v25  ;;  %v161_v8 = vsel %vm151_vm0, %v1544_v4, 0.0  ;;  %v147_v44 = vld [vmem:[#allocation2 + $0x90] sm:$0xff] }
  0x1e   :  { %1214 = vmatpush3.bf16.msra.mxu0 %v90_v9  ;;  %v66_v38 = vmul.f32 %v41_v35, %v27_v31  ;;  %v67_v39 = vmul.f32 %v41_v35, %v28_v32 }
  0x1f   :  { %1215 = vmatprep.subr.bf16.mxu0 %v91_v19  ;;  %v68_v52 = vmul.f32 %v59_v48, %v29_v49  ;;  %v69_v53 = vmul.f32 %v59_v48, %v30_v50 }
  0x20   :  { %v70_v43 = vpack.c.bf16 %v67_v39, %v66_v38 }
  0x21   :  { %v71_v54 = vpack.c.bf16 %v69_v53, %v68_v52 }
  0x22   :  { %1216 = vmatpush3.bf16.msra.mxu0 %v91_v19  ;;  %1225 = vmatprep.mubr.bf16.mxu0 %v70_v43  ;;  %v1459_v43 = vmov 0.0  }
  0x23   :  { %1217 = vmatprep.subr.bf16.mxu0 %v92_v30  ;;  %1229 = vmatprep.subr.bf16.mxu1 %v1459_v43 }
  0x24   :  { %1233 = vmatprep.mubr.msk.bf16.mxu1 %vm1460_vm1, %v1459_v43 }
  0x26   :  { %1218 = vmatpush3.bf16.msra.mxu0 %v92_v30 }
  0x27   :  { %1219 = vmatprep.subr.bf16.mxu0 %v93_v40 }
  0x2a   :  { %1220 = vmatpush3.bf16.msra.mxu0 %v93_v40  ;;  %v145_v40 = vld [vmem:[#allocation2 + $0x80] sm:$0xff] }
  0x2b   :  { %1221 = vmatprep.subr.bf16.mxu0 %v94_v45  ;;  %v1589_v42 = vpack.c.bf16 %v146_v41, %v145_v40 }
  0x2d   :  { %1230 = vmatpush3.bf16.msra.mxu1 %v1589_v42 }
  0x2e   :  { %1222 = vmatpush3.bf16.msra.mxu0 %v94_v45  ;;  %1231 = vmatprep.subr.bf16.mxu1 %v1459_v43  ;;  %v148_v45 = vld [vmem:[#allocation2 + $0x98] sm:$0xff] }
  0x2f   :  { %1223 = vmatprep.subr.bf16.mxu0 %v95_v51  ;;  %v1595_v46 = vpack.c.bf16 %v148_v45, %v147_v44 }
  0x31   :  { %1232 = vmatpush3.bf16.msra.mxu1 %v1595_v46 }
  0x32   :  { %1224 = vmatpush3.bf16.msra.mxu0 %v95_v51  ;;  %1245 = vmatprep.subr.bf16.mxu1 %v1459_v43 }
  0x33   :  { %1263 = vmatprep.subr.bf16.mxu0 %v1459_v43 }
  0x35   :  { %1226 = vmatmul.mubr.bf16.vlgmr.msra.gmra.mrb[0].mxu0 %v71_v54 }
  0x36   :  { %1269 = vmatprep.mubr.msk.bf16.mxu0 %vm1460_vm1, %v1459_v43 }
  0xa5   :  { %v154_v55 = vpop.xlane.xlu0 %153 }
  0xa6   :  { %v171_v56 = vmul.f32 0.03125, %v154_v55 }
  0xa8   :  { %v1533_v63 = vsub.f32 %v1506_v18, %v171_v56 }
  0xaa   :  { %v183_v6 = vmul.f32 %v1533_v63, %v1533_v63 }
  0xac   :  { %v189_v10 = vsel %vm151_vm0, %v183_v6, 0.0 }
 0x108   :  { %v1227_v58 = vpop.f32.mrb[0].mxu0 }
 0x109   :  { %v130_v60 = vpop.f32.mrb[1].mxu0  ;;  %v1535_v1 = vadd.f32 %v1227_v58, %v1131_v59 }
 0x10a   :  { %v1530_v61 = vadd.f32 %v1126_v57, %v130_v60  ;;  %v1228_v62 = vpop.f32.mrb[2].mxu0 }
 0x10b   :  { %v133_v0 = vpop.f32.mrb[3].mxu0  ;;  %v164_v7 = vsel %vm151_vm0, %v1535_v1, 0.0  ;;  %v1554_v9 = vadd.f32 %v1228_v62, %v1131_v59  ;;  %v1603_v62 = vld [vmem:[#allocation2 + $0x100] sm:$0xff] }
 0x10c   :  { %v1537_v2 = vadd.f32 %v1126_v57, %v133_v0  ;;  %v155_v3 = vsel %vm151_vm0, %v1530_v61, 0.0 }
 0x10d   :  { %156 = vadd.xlane.f32.xlu0 %v155_v3  ;;  %v167_v11 = vsel %vm151_vm0, %v1554_v9, 0.0 }
 0x10e   :  { %v158_v5 = vsel %vm151_vm0, %v1537_v2, 0.0 }
 0x10f   :  { %159 = vadd.xlane.f32.xlu1 %v158_v5 }
 0x111   :  { %165 = vadd.xlane.f32.xlu0 %v164_v7  ;;  %v234_v7 = vrot.slane %v1603_v62, %v1514_v25 }
 0x113   :  { %162 = vadd.xlane.f32.xlu1 %v161_v8 }
 0x115   :  { %190 = vadd.xlane.f32.xlu0 %v189_v10  ;;  %v243_v10 = vsub.s32 1, %v1495_v13 }
 0x117   :  { %168 = vadd.xlane.f32.xlu1 %v167_v11 }
 0x19a   :  { %v157_v12 = vpop.xlane.xlu0 %156 }
 0x19b   :  { %v172_v14 = vmul.f32 0.03125, %v157_v12 }
 0x19c   :  { %v160_v15 = vpop.xlane.xlu1 %159 }
 0x19d   :  { %v1560_v16 = vsub.f32 %v1530_v61, %v172_v14  ;;  %v173_v17 = vmul.f32 0.03125, %v160_v15 }
 0x19e   :  { %v166_v19 = vpop.xlane.xlu0 %165 }
 0x19f   :  { %v1563_v20 = vsub.f32 %v1537_v2, %v173_v17  ;;  %v175_v21 = vmul.f32 0.03125, %v166_v19  ;;  %v184_v22 = vmul.f32 %v1560_v16, %v1560_v16  ;;  %v244_v17 = vrot.slane %v1603_v62, %v243_v10 }
 0x1a0   :  { %v163_v23 = vpop.xlane.xlu1 %162 }
 0x1a1   :  { %v1568_v24 = vsub.f32 %v1535_v1, %v175_v21  ;;  %v174_v26 = vmul.f32 0.03125, %v163_v23  ;;  %v192_v27 = vsel %vm151_vm0, %v184_v22, 0.0  ;;  %v185_v28 = vmul.f32 %v1563_v20, %v1563_v20 }
 0x1a2   :  { %193 = vadd.xlane.f32.xlu1 %v192_v27  ;;  %v191_v47 = vpop.xlane.xlu0 %190 }
 0x1a3   :  { %v1574_v29 = vsub.f32 %v1544_v4, %v174_v26  ;;  %v195_v30 = vsel %vm151_vm0, %v185_v28, 0.0  ;;  %v187_v31 = vmul.f32 %v1568_v24, %v1568_v24  ;;  %v207_v48 = vmul.f32 0.03125, %v191_v47 }
 0x1a4   :  { %v169_v32 = vpop.xlane.xlu1 %168  ;;  %196 = vadd.xlane.f32.xlu0 %v195_v30 }
 0x1a5   :  { %v176_v33 = vmul.f32 0.03125, %v169_v32  ;;  %v186_v34 = vmul.f32 %v1574_v29, %v1574_v29  ;;  %v201_v37 = vsel %vm151_vm0, %v187_v31, 0.0  ;;  %v213_v49 = vadd.f32 1e-05, %v207_v48 }
 0x1a7   :  { %v1582_v35 = vsub.f32 %v1554_v9, %v176_v33  ;;  %v198_v36 = vsel %vm151_vm0, %v186_v34, 0.0  ;;  %1367 = vrsqrt.f32 %v213_v49 }
 0x1a8   :  { %199 = vadd.xlane.f32.xlu1 %v198_v36  ;;  %202 = vadd.xlane.f32.xlu0 %v201_v37 }
 0x1a9   :  { %v188_v38 = vmul.f32 %v1582_v35, %v1582_v35 }
 0x1ab   :  { %v204_v39 = vsel %vm151_vm0, %v188_v38, 0.0 }
 0x1ac   :  { %205 = vadd.xlane.f32.xlu1 %v204_v39 }
 0x1b1   :  { %v1368_v60 = vpop.eup %1367 }
 0x1b2   :  { %v225_v8 = vmul.f32 %v1368_v60, %v1533_v63 }
 0x1b4   :  { %v235_v15 = vmul.f32 %v234_v7, %v225_v8 }
 0x1b6   :  { %v245_v23 = vadd.f32 %v244_v17, %v235_v15 }
 0x22f   :  { %v194_v50 = vpop.xlane.xlu1 %193 }
 0x230   :  { %v208_v51 = vmul.f32 0.03125, %v194_v50 }
 0x231   :  { %v197_v52 = vpop.xlane.xlu0 %196 }
 0x232   :  { %v214_v53 = vadd.f32 1e-05, %v208_v51  ;;  %v209_v54 = vmul.f32 0.03125, %v197_v52 }
 0x234   :  { %1369 = vrsqrt.f32 %v214_v53  ;;  %v215_v55 = vadd.f32 1e-05, %v209_v54 }
 0x235   :  { %v200_v56 = vpop.xlane.xlu1 %199  ;;  %v203_v57 = vpop.xlane.xlu0 %202 }
 0x236   :  { %1371 = vrsqrt.f32 %v215_v55  ;;  %v210_v58 = vmul.f32 0.03125, %v200_v56  ;;  %v211_v59 = vmul.f32 0.03125, %v203_v57 }
 0x238   :  { %v216_v0 = vadd.f32 1e-05, %v210_v58  ;;  %v217_v3 = vadd.f32 1e-05, %v211_v59 }
 0x239   :  { %v206_v5 = vpop.xlane.xlu1 %205 }
 0x23a   :  { %1373 = vrsqrt.f32 %v216_v0  ;;  %v212_v6 = vmul.f32 0.03125, %v206_v5  ;;  %v395_v0 = vld [vmem:[#allocation2 + $0x110] sm:$0xff] }
 0x23b   :  { %1375 = vrsqrt.f32 %v217_v3 }
 0x23c   :  { %v218_v11 = vadd.f32 1e-05, %v212_v6 }
 0x23e   :  { %v1370_v12 = vpop.eup %1369  ;;  %1377 = vrsqrt.f32 %v218_v11 }
 0x23f   :  { %v226_v14 = vmul.f32 %v1370_v12, %v1560_v16 }
 0x240   :  { %v1372_v19 = vpop.eup %1371 }
 0x241   :  { %v227_v21 = vmul.f32 %v1372_v19, %v1563_v20  ;;  %v236_v22 = vmul.f32 %v234_v7, %v226_v14  ;;  %v397_v19 = vld [vmem:[#allocation2 + $0x120] sm:$0xff] }
 0x243   :  { %v246_v26 = vadd.f32 %v244_v17, %v236_v22  ;;  %v237_v27 = vmul.f32 %v234_v7, %v227_v21 }
 0x244   :  { %v1374_v25 = vpop.eup %1373 }
 0x245   :  { %v1376_v63 = vpop.eup %1375  ;;  %v228_v28 = vmul.f32 %v1374_v25, %v1574_v29  ;;  %v251_v30 = vpack.c.bf16 %v246_v26, %v245_v23  ;;  %v247_v20 = vadd.f32 %v244_v17, %v237_v27  ;;  %v398_v26 = vld [vmem:[#allocation2 + $0x128] sm:$0xff] }
 0x246   :  { %v229_v31 = vmul.f32 %v1376_v63, %v1568_v24 }
 0x247   :  { %1234 = vmatmul.mubr.msk.bf16.vlgmr.msra.gmra.mrb[0].mxu1 %vm151_vm0, %v251_v30  ;;  %1264 = vmatpush3.bf16.msra.mxu0 %v251_v30  ;;  %v255_v16 = vsel %vm151_vm0, %v251_v30, 0  ;;  %v238_v32 = vmul.f32 %v234_v7, %v228_v28 }
 0x248   :  { %v1378_v33 = vpop.eup %1377  ;;  %1246 = vmatpush3.bf16.xpose.msra.mxu1 %v255_v16  ;;  %1265 = vmatprep.subr.bf16.mxu0 %v1459_v43  ;;  %v239_v24 = vmul.f32 %v234_v7, %v229_v31 }
 0x249   :  { %v230_v34 = vmul.f32 %v1378_v33, %v1582_v35  ;;  %v248_v36 = vadd.f32 %v244_v17, %v238_v32  ;;  %1237 = vmatprep.mubr.msk.bf16.mxu1 %vm1460_vm1, %v1459_v43  ;;  %1247 = vmatprep.subr.bf16.mxu1 %v1459_v43  ;;  %v399_v32 = vld [vmem:[#allocation2 + $0x130] sm:$0xff] }
 0x24a   :  { %v249_v38 = vadd.f32 %v244_v17, %v239_v24 }
 0x24b   :  { %v252_v29 = vpack.c.bf16 %v248_v36, %v247_v20  ;;  %v240_v37 = vmul.f32 %v234_v7, %v230_v34  ;;  %v396_v7 = vld [vmem:[#allocation2 + $0x118] sm:$0xff] }
 0x24c   :  { %v400_v36 = vld [vmem:[#allocation2 + $0x138] sm:$0xff] }
 0x24d   :  { %1266 = vmatpush3.bf16.msra.mxu0 %v252_v29  ;;  %v250_v39 = vadd.f32 %v244_v17, %v240_v37  ;;  %v258_v40 = vsel %vm151_vm0, %v252_v29, 0 }
 0x24e   :  { %1267 = vmatprep.subr.bf16.mxu0 %v1459_v43 }
 0x24f   :  { %1238 = vmatmul.mubr.msk.bf16.gmra.mrb[4].mxu1 %vm151_vm0, %v252_v29  ;;  %v253_v41 = vpack.c.bf16 %v250_v39, %v249_v38 }
 0x250   :  { %1248 = vmatpush3.bf16.xpose.msra.mxu1 %v258_v40  ;;  %1241 = vmatprep.mubr.msk.bf16.mxu1 %vm1460_vm1, %v1459_v43 }
 0x251   :  { %1268 = vmatpush3.bf16.msra.mxu0 %v253_v41  ;;  %1249 = vmatprep.subr.bf16.mxu1 %v1459_v43  ;;  %v261_v35 = vsel %vm151_vm0, %v253_v41, 0 }
 0x252   :  { %1297 = vmatprep.subr.bf16.mxu0 %v1459_v43 }
 0x257   :  { %1242 = vmatmul.mubr.msk.bf16.gmra.mrb[8].mxu1 %vm151_vm0, %v253_v41 }
 0x258   :  { %1250 = vmatpush3.bf16.xpose.msra.mxu1 %v261_v35  ;;  %1251 = vmatprep.mubr.msk.bf16.mxu1 %vm1460_vm1, %v1459_v43 }
 0x259   :  { %1281 = vmatprep.subr.bf16.mxu1 %v1459_v43 }
 0x31a   :  { %v297_v44 = vpop.f32.mrb[0].mxu1 }
 0x31b   :  { %v1235_v45 = vpop.f32.mrb[1].mxu1 }
 0x31c   :  { %v300_v47 = vpop.f32.mrb[2].mxu1 }
 0x31d   :  { %v320_v48 = vpack.c.bf16 %v300_v47, %v297_v44  ;;  %v1236_v49 = vpop.f32.mrb[3].mxu1 }
 0x31f   :  { %1252 = vmatmul.mubr.msk.bf16.vlgmr.msra.gmra.mrb[12].mxu1 %vm151_vm0, %v320_v48 }
 0x320   :  { %1255 = vmatprep.mubr.msk.bf16.mxu1 %vm1460_vm1, %v1459_v43 }
 0x322   :  { %v305_v50 = vpop.f32.mrb[4].mxu1 }
 0x323   :  { %v1239_v51 = vpop.f32.mrb[5].mxu1 }
 0x324   :  { %v308_v52 = vpop.f32.mrb[6].mxu1 }
 0x325   :  { %v321_v53 = vpack.c.bf16 %v308_v52, %v305_v50  ;;  %v1240_v54 = vpop.f32.mrb[7].mxu1 }
 0x327   :  { %1256 = vmatmul.mubr.msk.bf16.gmra.mrb[16].mxu1 %vm151_vm0, %v321_v53 }
 0x328   :  { %1259 = vmatprep.mubr.msk.bf16.mxu1 %vm1460_vm1, %v1459_v43 }
 0x32a   :  { %v313_v55 = vpop.f32.mrb[8].mxu1 }
 0x32b   :  { %v1243_v56 = vpop.f32.mrb[9].mxu1 }
 0x32c   :  { %v316_v57 = vpop.f32.mrb[10].mxu1 }
 0x32d   :  { %v322_v58 = vpack.c.bf16 %v316_v57, %v313_v55  ;;  %v1244_v59 = vpop.f32.mrb[11].mxu1 }
 0x32f   :  { %1260 = vmatmul.mubr.msk.bf16.gmra.mrb[20].mxu1 %vm151_vm0, %v322_v58 }
 0x330   :  { %1285 = vmatprep.mubr.msk.bf16.mxu1 %vm1460_vm1, %v1459_v43 }
 0x3f2   :  { %v366_v60 = vpop.f32.mrb[12].mxu1 }
 0x3f3   :  { %v389_v3 = vmul.f32 0.17677669, %v366_v60  ;;  %v1253_v5 = vpop.f32.mrb[13].mxu1 }
 0x3f4   :  { %v369_v6 = vpop.f32.mrb[14].mxu1 }
 0x3f5   :  { %v390_v8 = vmul.f32 0.17677669, %v369_v6  ;;  %v1254_v10 = vpop.f32.mrb[15].mxu1  ;;  %v401_v11 = vadd.f32 %v395_v0, %v389_v3 }
 0x3f7   :  { %v408_v12 = vsel %vm407_vm2, %v401_v11, -inf  ;;  %v402_v14 = vadd.f32 %v396_v7, %v390_v8 }
 0x3f8   :  { %409 = vmax.xlane.f32.xlu0 %v408_v12 }
 0x3f9   :  { %v411_v15 = vsel %vm407_vm2, %v402_v14, -inf }
 0x3fa   :  { %412 = vmax.xlane.f32.xlu1 %v411_v15  ;;  %v374_v17 = vpop.f32.mrb[16].mxu1 }
 0x3fb   :  { %v391_v21 = vmul.f32 0.17677669, %v374_v17  ;;  %v1257_v22 = vpop.f32.mrb[17].mxu1 }
 0x3fc   :  { %v377_v23 = vpop.f32.mrb[18].mxu1 }
 0x3fd   :  { %v392_v25 = vmul.f32 0.17677669, %v377_v23  ;;  %v1258_v27 = vpop.f32.mrb[19].mxu1  ;;  %v403_v63 = vadd.f32 %v397_v19, %v391_v21 }
 0x3ff   :  { %v414_v28 = vsel %vm407_vm2, %v403_v63, -inf  ;;  %v404_v30 = vadd.f32 %v398_v26, %v392_v25 }
 0x400   :  { %415 = vmax.xlane.f32.xlu0 %v414_v28 }
 0x401   :  { %v417_v31 = vsel %vm407_vm2, %v404_v30, -inf }
 0x402   :  { %418 = vmax.xlane.f32.xlu1 %v417_v31  ;;  %v382_v16 = vpop.f32.mrb[20].mxu1 }
 0x403   :  { %v393_v33 = vmul.f32 0.17677669, %v382_v16  ;;  %v1261_v20 = vpop.f32.mrb[21].mxu1 }
 0x404   :  { %v385_v34 = vpop.f32.mrb[22].mxu1 }
 0x405   :  { %v394_v24 = vmul.f32 0.17677669, %v385_v34  ;;  %v1262_v29 = vpop.f32.mrb[23].mxu1  ;;  %v405_v37 = vadd.f32 %v399_v32, %v393_v33 }
 0x407   :  { %v420_v38 = vsel %vm407_vm2, %v405_v37, -inf  ;;  %v406_v39 = vadd.f32 %v400_v36, %v394_v24 }
 0x408   :  { %421 = vmax.xlane.f32.xlu0 %v420_v38 }
 0x409   :  { %v423_v40 = vsel %vm407_vm2, %v406_v39, -inf }
 0x40a   :  { %424 = vmax.xlane.f32.xlu1 %v423_v40 }
 0x485   :  { %v410_v41 = vpop.xlane.xlu0 %409 }
 0x486   :  { %v426_v35 = vsub.f32 %v401_v11, %v410_v41 }
 0x487   :  { %v413_v44 = vpop.xlane.xlu1 %412 }
 0x488   :  { %v432_v45 = vmul.f32 1.442695, %v426_v35  ;;  %v427_v47 = vsub.f32 %v402_v14, %v413_v44 }
 0x48a   :  { %1379 = vpow2.f32 %v432_v45  ;;  %v434_v48 = vmul.f32 1.442695, %v427_v47 }
 0x48c   :  { %1381 = vpow2.f32 %v434_v48 }
 0x48d   :  { %v416_v49 = vpop.xlane.xlu0 %415 }
 0x48e   :  { %v428_v50 = vsub.f32 %v403_v63, %v416_v49 }
 0x48f   :  { %v419_v51 = vpop.xlane.xlu1 %418 }
 0x490   :  { %v436_v52 = vmul.f32 1.442695, %v428_v50  ;;  %v429_v53 = vsub.f32 %v404_v30, %v419_v51 }
 0x492   :  { %1383 = vpow2.f32 %v436_v52  ;;  %v438_v54 = vmul.f32 1.442695, %v429_v53 }
 0x494   :  { %v1380_v55 = vpop.eup %1379  ;;  %1385 = vpow2.f32 %v438_v54 }
 0x495   :  { %v422_v56 = vpop.xlane.xlu0 %421  ;;  %v444_v57 = vsel %vm407_vm2, %v1380_v55, 0.0 }
 0x496   :  { %v1382_v58 = vpop.eup %1381  ;;  %v430_v59 = vsub.f32 %v405_v37, %v422_v56  ;;  %445 = vadd.xlane.f32.xlu0 %v444_v57 }
 0x497   :  { %v425_v60 = vpop.xlane.xlu1 %424  ;;  %v447_v0 = vsel %vm407_vm2, %v1382_v58, 0.0 }
 0x498   :  { %v440_v3 = vmul.f32 1.442695, %v430_v59  ;;  %v431_v5 = vsub.f32 %v406_v39, %v425_v60  ;;  %448 = vadd.xlane.f32.xlu1 %v447_v0 }
 0x49a   :  { %1387 = vpow2.f32 %v440_v3  ;;  %v442_v6 = vmul.f32 1.442695, %v431_v5 }
 0x49c   :  { %v1384_v7 = vpop.eup %1383  ;;  %1389 = vpow2.f32 %v442_v6 }
 0x49d   :  { %v450_v8 = vsel %vm407_vm2, %v1384_v7, 0.0 }
 0x49e   :  { %v1386_v10 = vpop.eup %1385  ;;  %451 = vadd.xlane.f32.xlu0 %v450_v8 }
 0x49f   :  { %v453_v11 = vsel %vm407_vm2, %v1386_v10, 0.0 }
 0x4a0   :  { %454 = vadd.xlane.f32.xlu1 %v453_v11 }
 0x4a4   :  { %v1388_v12 = vpop.eup %1387 }
 0x4a5   :  { %v456_v14 = vsel %vm407_vm2, %v1388_v12, 0.0 }
 0x4a6   :  { %v1390_v15 = vpop.eup %1389  ;;  %457 = vadd.xlane.f32.xlu0 %v456_v14 }
 0x4a7   :  { %v459_v17 = vsel %vm407_vm2, %v1390_v15, 0.0 }
 0x4a8   :  { %460 = vadd.xlane.f32.xlu1 %v459_v17 }
 0x4b9   :  { %550 = vrot.lane.b32.xlu1 %v1595_v46, %s1461_s0 }
 0x4bc   :  { %548 = vrot.lane.b32.xlu0 %v1589_v42, %s1461_s0 }
 0x523   :  { %v446_v19 = vpop.xlane.xlu0 %445 }
 0x524   :  { %1391 = vrcp.f32 %v446_v19 }
 0x525   :  { %v449_v21 = vpop.xlane.xlu1 %448 }
 0x526   :  { %1393 = vrcp.f32 %v449_v21 }
 0x52b   :  { %v452_v22 = vpop.xlane.xlu0 %451 }
 0x52c   :  { %1395 = vrcp.f32 %v452_v22 }
 0x52d   :  { %v455_v23 = vpop.xlane.xlu1 %454 }
 0x52e   :  { %v1392_v26 = vpop.eup %1391  ;;  %1397 = vrcp.f32 %v455_v23 }
 0x52f   :  { %v468_v27 = vmul.f32 %v1392_v26, %v1380_v55 }
 0x530   :  { %v1394_v25 = vpop.eup %1393 }
 0x531   :  { %v469_v63 = vmul.f32 %v1394_v25, %v1382_v58 }
 0x533   :  { %v458_v28 = vpop.xlane.xlu0 %457  ;;  %v474_v30 = vpack.c.bf16 %v469_v63, %v468_v27 }
 0x534   :  { %1399 = vrcp.f32 %v458_v28 }
 0x535   :  { %1270 = vmatmul.mubr.msk.bf16.vlgmr.msra.gmra.mrb[4].mxu0 %vm407_vm2, %v474_v30  ;;  %v461_v31 = vpop.xlane.xlu1 %460 }
 0x536   :  { %v1396_v16 = vpop.eup %1395  ;;  %1401 = vrcp.f32 %v461_v31  ;;  %1273 = vmatprep.mubr.msk.bf16.mxu0 %vm1460_vm1, %v1459_v43 }
 0x537   :  { %v549_v33 = vpop.permute.xlu0 %548  ;;  %v470_v20 = vmul.f32 %v1396_v16, %v1384_v7 }
 0x538   :  { %v1398_v32 = vpop.eup %1397  ;;  %1282 = vmatpush3.bf16.msra.mxu1 %v549_v33 }
 0x539   :  { %v471_v34 = vmul.f32 %v1398_v32, %v1386_v10  ;;  %1283 = vmatprep.subr.bf16.mxu1 %v1459_v43  ;;  %v551_v40 = vpop.permute.xlu1 %550 }
 0x53b   :  { %v475_v36 = vpack.c.bf16 %v471_v34, %v470_v20 }
 0x53c   :  { %1284 = vmatpush3.bf16.msra.mxu1 %v551_v40 }
 0x53d   :  { %1274 = vmatmul.mubr.msk.bf16.gmra.mrb[8].mxu0 %vm407_vm2, %v475_v36  ;;  %1313 = vmatprep.subr.bf16.mxu1 %v1459_v43 }
 0x53e   :  { %v1400_v24 = vpop.eup %1399  ;;  %1277 = vmatprep.mubr.msk.bf16.mxu0 %vm1460_vm1, %v1459_v43 }
 0x53f   :  { %v472_v37 = vmul.f32 %v1400_v24, %v1388_v12 }
 0x540   :  { %v1402_v29 = vpop.eup %1401 }
 0x541   :  { %v473_v38 = vmul.f32 %v1402_v29, %v1390_v15 }
 0x543   :  { %v476_v39 = vpack.c.bf16 %v473_v38, %v472_v37 }
 0x545   :  { %1278 = vmatmul.mubr.msk.bf16.gmra.mrb[12].mxu0 %vm407_vm2, %v476_v39 }
 0x546   :  { %1301 = vmatprep.mubr.msk.bf16.mxu0 %vm1460_vm1, %v1459_v43 }
 0x608   :  { %v520_v41 = vpop.f32.mrb[4].mxu0 }
 0x609   :  { %v1271_v35 = vpop.f32.mrb[5].mxu0 }
 0x60a   :  { %v523_v44 = vpop.f32.mrb[6].mxu0 }
 0x60b   :  { %v543_v45 = vpack.c.bf16 %v523_v44, %v520_v41  ;;  %v1272_v47 = vpop.f32.mrb[7].mxu0 }
 0x60d   :  { %1286 = vmatmul.mubr.msk.bf16.vlgmr.msra.gmra.mrb[24].mxu1 %vm151_vm0, %v543_v45 }
 0x60e   :  { %1289 = vmatprep.mubr.msk.bf16.mxu1 %vm1460_vm1, %v1459_v43 }
 0x610   :  { %v528_v48 = vpop.f32.mrb[8].mxu0 }
 0x611   :  { %v1275_v49 = vpop.f32.mrb[9].mxu0 }
 0x612   :  { %v531_v50 = vpop.f32.mrb[10].mxu0 }
 0x613   :  { %v544_v51 = vpack.c.bf16 %v531_v50, %v528_v48  ;;  %v1276_v52 = vpop.f32.mrb[11].mxu0 }
 0x615   :  { %1290 = vmatmul.mubr.msk.bf16.gmra.mrb[28].mxu1 %vm151_vm0, %v544_v51 }
 0x616   :  { %1293 = vmatprep.mubr.msk.bf16.mxu1 %vm1460_vm1, %v1459_v43 }
 0x618   :  { %v536_v53 = vpop.f32.mrb[12].mxu0 }
 0x619   :  { %v1279_v54 = vpop.f32.mrb[13].mxu0 }
 0x61a   :  { %v539_v55 = vpop.f32.mrb[14].mxu0 }
 0x61b   :  { %v545_v56 = vpack.c.bf16 %v539_v55, %v536_v53  ;;  %v1280_v57 = vpop.f32.mrb[15].mxu0 }
 0x61d   :  { %1294 = vmatmul.mubr.msk.bf16.gmra.mrb[32].mxu1 %vm151_vm0, %v545_v56 }
 0x61e   :  { %1321 = vmatprep.mubr.msk.bf16.mxu1 %vm1460_vm1, %v1459_v43 }
 0x6e0   :  { %v597_v58 = vpop.f32.mrb[24].mxu1 }
 0x6e1   :  { %v620_v59 = vadd.f32 %v597_v58, %v1506_v18  ;;  %v1287_v60 = vpop.f32.mrb[25].mxu1 }
 0x6e2   :  { %v600_v0 = vpop.f32.mrb[26].mxu1 }
 0x6e3   :  { %v1678_v3 = vadd.f32 %v600_v0, %v1530_v61  ;;  %v1288_v5 = vpop.f32.mrb[27].mxu1  ;;  %v626_v6 = vsel %vm151_vm0, %v620_v59, 0.0 }
 0x6e4   :  { %627 = vadd.xlane.f32.xlu1 %v626_v6 }
 0x6e5   :  { %v629_v7 = vsel %vm151_vm0, %v1678_v3, 0.0 }
 0x6e6   :  { %630 = vadd.xlane.f32.xlu0 %v629_v7  ;;  %v706_v7 = vsub.s32 2, %v1495_v13 }
 0x6e8   :  { %v605_v8 = vpop.f32.mrb[28].mxu1 }
 0x6e9   :  { %v1684_v10 = vadd.f32 %v605_v8, %v1537_v2  ;;  %v1291_v11 = vpop.f32.mrb[29].mxu1 }
 0x6ea   :  { %v608_v12 = vpop.f32.mrb[30].mxu1  ;;  %v716_v11 = vsub.s32 3, %v1495_v13 }
 0x6eb   :  { %v623_v18 = vadd.f32 %v1544_v4, %v608_v12  ;;  %v1292_v14 = vpop.f32.mrb[31].mxu1  ;;  %v632_v61 = vsel %vm151_vm0, %v1684_v10, 0.0 }
 0x6ec   :  { %633 = vadd.xlane.f32.xlu0 %v632_v61 }
 0x6ed   :  { %v635_v15 = vsel %vm151_vm0, %v623_v18, 0.0 }
 0x6ee   :  { %636 = vadd.xlane.f32.xlu1 %v635_v15 }
 0x6f0   :  { %v613_v17 = vpop.f32.mrb[32].mxu1 }
 0x6f1   :  { %v1691_v19 = vadd.f32 %v613_v17, %v1535_v1  ;;  %v1295_v21 = vpop.f32.mrb[33].mxu1 }
 0x6f2   :  { %v616_v22 = vpop.f32.mrb[34].mxu1 }
 0x6f3   :  { %v1694_v2 = vadd.f32 %v616_v22, %v1554_v9  ;;  %v1296_v23 = vpop.f32.mrb[35].mxu1  ;;  %v638_v4 = vsel %vm151_vm0, %v1691_v19, 0.0 }
 0x6f4   :  { %639 = vadd.xlane.f32.xlu0 %v638_v4  ;;  %v717_v23 = vrot.slane %v1603_v62, %v716_v11 }
 0x6f5   :  { %v641_v26 = vsel %vm151_vm0, %v1694_v2, 0.0 }
 0x6f6   :  { %642 = vadd.xlane.f32.xlu1 %v641_v26 }
 0x771   :  { %v628_v25 = vpop.xlane.xlu1 %627 }
 0x772   :  { %v644_v27 = vmul.f32 0.03125, %v628_v25 }
 0x773   :  { %v631_v63 = vpop.xlane.xlu0 %630 }
 0x774   :  { %v650_v28 = vsub.f32 %v620_v59, %v644_v27  ;;  %v645_v1 = vmul.f32 0.03125, %v631_v63 }
 0x776   :  { %v651_v30 = vsub.f32 %v1678_v3, %v645_v1  ;;  %v656_v31 = vmul.f32 %v650_v28, %v650_v28 }
 0x778   :  { %v662_v9 = vsel %vm151_vm0, %v656_v31, 0.0  ;;  %v657_v16 = vmul.f32 %v651_v30, %v651_v30 }
 0x779   :  { %v634_v32 = vpop.xlane.xlu0 %633  ;;  %663 = vadd.xlane.f32.xlu0 %v662_v9 }
 0x77a   :  { %v646_v33 = vmul.f32 0.03125, %v634_v32  ;;  %v665_v20 = vsel %vm151_vm0, %v657_v16, 0.0 }
 0x77b   :  { %v637_v34 = vpop.xlane.xlu1 %636  ;;  %666 = vadd.xlane.f32.xlu1 %v665_v20 }
 0x77c   :  { %v1704_v36 = vsub.f32 %v1684_v10, %v646_v33  ;;  %v647_v24 = vmul.f32 0.03125, %v637_v34 }
 0x77e   :  { %v1706_v29 = vsub.f32 %v623_v18, %v647_v24  ;;  %v658_v37 = vmul.f32 %v1704_v36, %v1704_v36 }
 0x780   :  { %v668_v38 = vsel %vm151_vm0, %v658_v37, 0.0  ;;  %v659_v39 = vmul.f32 %v1706_v29, %v1706_v29 }
 0x781   :  { %669 = vadd.xlane.f32.xlu0 %v668_v38  ;;  %v640_v40 = vpop.xlane.xlu0 %639 }
 0x782   :  { %v648_v41 = vmul.f32 0.03125, %v640_v40  ;;  %v671_v35 = vsel %vm151_vm0, %v659_v39, 0.0 }
 0x783   :  { %672 = vadd.xlane.f32.xlu1 %v671_v35  ;;  %v643_v44 = vpop.xlane.xlu1 %642 }
 0x784   :  { %v1715_v45 = vsub.f32 %v1691_v19, %v648_v41  ;;  %v649_v47 = vmul.f32 0.03125, %v643_v44 }
 0x786   :  { %v1718_v48 = vsub.f32 %v1694_v2, %v649_v47  ;;  %v660_v49 = vmul.f32 %v1715_v45, %v1715_v45 }
 0x788   :  { %v674_v50 = vsel %vm151_vm0, %v660_v49, 0.0  ;;  %v661_v51 = vmul.f32 %v1718_v48, %v1718_v48  ;;  %v857_v49 = vld [vmem:[#allocation2 + $0xa0] sm:$0xff] }
 0x789   :  { %675 = vadd.xlane.f32.xlu0 %v674_v50  ;;  %v858_v50 = vld [vmem:[#allocation2 + $0xa8] sm:$0xff] }
 0x78a   :  { %v677_v52 = vsel %vm151_vm0, %v661_v51, 0.0  ;;  %v860_v51 = vld [vmem:[#allocation2 + $0xb8] sm:$0xff] }
 0x78b   :  { %678 = vadd.xlane.f32.xlu1 %v677_v52 }
 0x79c   :  { %733 = vrot.lane.b32.xlu1 %v1595_v46, %s1462_s14 }
 0x79f   :  { %731 = vrot.lane.b32.xlu0 %v1589_v42, %s1462_s14  ;;  %v707_v42 = vrot.slane %v1603_v62, %v706_v7 }
 0x806   :  { %v664_v53 = vpop.xlane.xlu0 %663 }
 0x807   :  { %v680_v54 = vmul.f32 0.03125, %v664_v53  ;;  %v861_v53 = vld [vmem:[#allocation2 + $0xc0] sm:$0xff] }
 0x808   :  { %v667_v55 = vpop.xlane.xlu1 %666 }
 0x809   :  { %v686_v56 = vadd.f32 1e-05, %v680_v54  ;;  %v681_v57 = vmul.f32 0.03125, %v667_v55  ;;  %v862_v54 = vld [vmem:[#allocation2 + $0xc8] sm:$0xff] }
 0x80a   :  { %v867_v55 = vpack.c.bf16 %v862_v54, %v861_v53 }
 0x80b   :  { %1403 = vrsqrt.f32 %v686_v56  ;;  %v687_v58 = vadd.f32 1e-05, %v681_v57  ;;  %v863_v56 = vld [vmem:[#allocation2 + $0xd0] sm:$0xff]  ;;  %v864_v57 = vld [vmem:[#allocation2 + $0xd8] sm:$0xff] }
 0x80d   :  { %1405 = vrsqrt.f32 %v687_v58  ;;  %v868_v58 = vpack.c.bf16 %v864_v57, %v863_v56 }
 0x80e   :  { %v670_v59 = vpop.xlane.xlu0 %669 }
 0x80f   :  { %v682_v60 = vmul.f32 0.03125, %v670_v59  ;;  %v729_v59 = vsub.s32 4, %v1495_v13 }
 0x810   :  { %v673_v0 = vpop.xlane.xlu1 %672 }
 0x811   :  { %v688_v5 = vadd.f32 1e-05, %v682_v60  ;;  %v683_v6 = vmul.f32 0.03125, %v673_v0  ;;  %v730_v60 = vrot.slane %v1603_v62, %v729_v59 }
 0x813   :  { %1407 = vrsqrt.f32 %v688_v5  ;;  %v689_v8 = vadd.f32 1e-05, %v683_v6 }
 0x815   :  { %v1404_v46 = vpop.eup %1403  ;;  %1409 = vrsqrt.f32 %v689_v8 }
 0x816   :  { %v698_v12 = vmul.f32 %v1404_v46, %v650_v28  ;;  %v676_v18 = vpop.xlane.xlu0 %675 }
 0x817   :  { %v1406_v14 = vpop.eup %1405  ;;  %v684_v61 = vmul.f32 0.03125, %v676_v18 }
 0x818   :  { %v699_v15 = vmul.f32 %v1406_v14, %v651_v30  ;;  %v679_v17 = vpop.xlane.xlu1 %678  ;;  %v708_v4 = vmul.f32 %v707_v42, %v698_v12 }
 0x819   :  { %v690_v21 = vadd.f32 1e-05, %v684_v61  ;;  %v685_v22 = vmul.f32 0.03125, %v679_v17 }
 0x81a   :  { %v709_v26 = vmul.f32 %v707_v42, %v699_v15  ;;  %v732_v25 = vpop.permute.xlu0 %731  ;;  %v718_v31 = vadd.f32 %v717_v23, %v708_v4 }
 0x81b   :  { %1411 = vrsqrt.f32 %v690_v21  ;;  %v691_v27 = vadd.f32 1e-05, %v685_v22  ;;  %1298 = vmatpush3.bf16.msra.mxu0 %v732_v25 }
 0x81c   :  { %v719_v63 = vadd.f32 %v717_v23, %v709_v26  ;;  %1299 = vmatprep.subr.bf16.mxu0 %v1459_v43  ;;  %v734_v1 = vpop.permute.xlu1 %733 }
 0x81d   :  { %v1408_v28 = vpop.eup %1407  ;;  %1413 = vrsqrt.f32 %v691_v27 }
 0x81e   :  { %v700_v30 = vmul.f32 %v1408_v28, %v1704_v36  ;;  %v724_v32 = vpack.c.bf16 %v719_v63, %v718_v31 }
 0x81f   :  { %v1410_v9 = vpop.eup %1409  ;;  %1300 = vmatpush3.bf16.msra.mxu0 %v734_v1 }
 0x820   :  { %v701_v16 = vmul.f32 %v1410_v9, %v1706_v29  ;;  %v710_v33 = vmul.f32 %v707_v42, %v700_v30 }
 0x822   :  { %1302 = vmatmul.mubr.msk.bf16.vlgmr.msra.gmra.mrb[16].mxu0 %vm151_vm0, %v724_v32  ;;  %v711_v20 = vmul.f32 %v707_v42, %v701_v16  ;;  %v720_v38 = vadd.f32 %v717_v23, %v710_v33 }
 0x823   :  { %1305 = vmatprep.mubr.msk.bf16.mxu0 %vm1460_vm1, %v1459_v43 }
 0x824   :  { %v721_v34 = vadd.f32 %v717_v23, %v711_v20 }
 0x825   :  { %v1412_v24 = vpop.eup %1411 }
 0x826   :  { %v702_v37 = vmul.f32 %v1412_v24, %v1715_v45  ;;  %v725_v40 = vpack.c.bf16 %v721_v34, %v720_v38  ;;  %v865_v45 = vpack.c.bf16 %v858_v50, %v857_v49 }
 0x827   :  { %v1414_v39 = vpop.eup %1413 }
 0x828   :  { %v703_v36 = vmul.f32 %v1414_v39, %v1718_v48  ;;  %v712_v29 = vmul.f32 %v707_v42, %v702_v37  ;;  %1314 = vmatpush3.bf16.msra.mxu1 %v865_v45  ;;  %v859_v48 = vld [vmem:[#allocation2 + $0xb0] sm:$0xff] }
 0x829   :  { %1315 = vmatprep.subr.bf16.mxu1 %v1459_v43  ;;  %v866_v52 = vpack.c.bf16 %v860_v51, %v859_v48 }
 0x82a   :  { %1306 = vmatmul.mubr.msk.bf16.gmra.mrb[20].mxu0 %vm151_vm0, %v725_v40  ;;  %v713_v41 = vmul.f32 %v707_v42, %v703_v36  ;;  %v722_v44 = vadd.f32 %v717_v23, %v712_v29 }
 0x82b   :  { %1309 = vmatprep.mubr.msk.bf16.mxu0 %vm1460_vm1, %v1459_v43 }
 0x82c   :  { %v723_v35 = vadd.f32 %v717_v23, %v713_v41  ;;  %1316 = vmatpush3.bf16.msra.mxu1 %v866_v52 }
 0x82d   :  { %1317 = vmatprep.subr.bf16.mxu1 %v1459_v43 }
 0x82e   :  { %v726_v47 = vpack.c.bf16 %v723_v35, %v722_v44 }
 0x830   :  { %1318 = vmatpush3.bf16.msra.mxu1 %v867_v55 }
 0x831   :  { %1319 = vmatprep.subr.bf16.mxu1 %v1459_v43 }
 0x832   :  { %1310 = vmatmul.mubr.msk.bf16.gmra.mrb[24].mxu0 %vm151_vm0, %v726_v47 }
 0x834   :  { %1320 = vmatpush3.bf16.msra.mxu1 %v868_v58 }
 0x8f5   :  { %v780_v0 = vpop.f32.mrb[16].mxu0 }
 0x8f6   :  { %v781_v5 = vadd.f32 %v780_v0, %v730_v60  ;;  %v1303_v6 = vpop.f32.mrb[17].mxu0 }
 0x8f7   :  { %v783_v7 = vpop.f32.mrb[18].mxu0 }
 0x8f8   :  { %v803_v8 = vmul.f32 %v781_v5, %v781_v5  ;;  %v784_v46 = vadd.f32 %v783_v7, %v730_v60  ;;  %v1304_v42 = vpop.f32.mrb[19].mxu0 }
 0x8fa   :  { %v809_v11 = vmul.f32 %v803_v8, %v781_v5  ;;  %v804_v12 = vmul.f32 %v784_v46, %v784_v46 }
 0x8fc   :  { %v815_v18 = vmul.f32 0.044715, %v809_v11  ;;  %v810_v14 = vmul.f32 %v804_v12, %v784_v46 }
 0x8fd   :  { %v788_v61 = vpop.f32.mrb[20].mxu0 }
 0x8fe   :  { %v821_v15 = vadd.f32 %v815_v18, %v781_v5  ;;  %v816_v17 = vmul.f32 0.044715, %v810_v14  ;;  %v789_v21 = vadd.f32 %v788_v61, %v730_v60  ;;  %v1307_v22 = vpop.f32.mrb[21].mxu0 }
 0x8ff   :  { %v791_v23 = vpop.f32.mrb[22].mxu0 }
 0x900   :  { %v827_v4 = vmul.f32 0.7978846, %v821_v15  ;;  %v822_v26 = vadd.f32 %v816_v17, %v784_v46  ;;  %v805_v25 = vmul.f32 %v789_v21, %v789_v21  ;;  %v792_v27 = vadd.f32 %v791_v23, %v730_v60  ;;  %v1308_v63 = vpop.f32.mrb[23].mxu0 }
 0x901   :  { %v953_v63 = vld [vmem:[#allocation2 + $0xf0] sm:$0xff] }
 0x902   :  { %1415 = vtanh.f32 %v827_v4  ;;  %v828_v1 = vmul.f32 0.7978846, %v822_v26  ;;  %v811_v28 = vmul.f32 %v805_v25, %v789_v21  ;;  %v806_v31 = vmul.f32 %v792_v27, %v792_v27  ;;  %v951_v25 = vld [vmem:[#allocation2 + $0xe0] sm:$0xff] }
 0x904   :  { %1417 = vtanh.f32 %v828_v1  ;;  %v817_v30 = vmul.f32 0.044715, %v811_v28  ;;  %v812_v9 = vmul.f32 %v806_v31, %v792_v27  ;;  %v954_v1 = vld [vmem:[#allocation2 + $0xf8] sm:$0xff] }
 0x905   :  { %v796_v16 = vpop.f32.mrb[24].mxu0  ;;  %v956_v28 = vpack.c.bf16 %v954_v1, %v953_v63 }
 0x906   :  { %v823_v32 = vadd.f32 %v817_v30, %v789_v21  ;;  %v818_v33 = vmul.f32 0.044715, %v812_v9  ;;  %v797_v20 = vadd.f32 %v796_v16, %v730_v60  ;;  %v1311_v34 = vpop.f32.mrb[25].mxu0  ;;  %v943_v16 = vsub.s32 5, %v1495_v13 }
 0x907   :  { %v799_v24 = vpop.f32.mrb[26].mxu0 }
 0x908   :  { %v829_v37 = vmul.f32 0.7978846, %v823_v32  ;;  %v824_v38 = vadd.f32 %v818_v33, %v792_v27  ;;  %v807_v39 = vmul.f32 %v797_v20, %v797_v20  ;;  %v800_v36 = vadd.f32 %v799_v24, %v730_v60  ;;  %v1312_v40 = vpop.f32.mrb[27].mxu0 }
 0x90a   :  { %1419 = vtanh.f32 %v829_v37  ;;  %v830_v29 = vmul.f32 0.7978846, %v824_v38  ;;  %v813_v41 = vmul.f32 %v807_v39, %v797_v20  ;;  %v808_v35 = vmul.f32 %v800_v36, %v800_v36 }
 0x90c   :  { %v1416_v44 = vpop.eup %1415  ;;  %1421 = vtanh.f32 %v830_v29  ;;  %v819_v47 = vmul.f32 0.044715, %v813_v41  ;;  %v814_v49 = vmul.f32 %v808_v35, %v800_v36 }
 0x90d   :  { %v839_v50 = vadd.f32 1.0, %v1416_v44 }
 0x90e   :  { %v1418_v45 = vpop.eup %1417  ;;  %v825_v48 = vadd.f32 %v819_v47, %v797_v20  ;;  %v820_v51 = vmul.f32 0.044715, %v814_v49 }
 0x90f   :  { %v845_v52 = vmul.f32 0.5, %v839_v50  ;;  %v840_v53 = vadd.f32 1.0, %v1418_v45 }
 0x910   :  { %v831_v54 = vmul.f32 0.7978846, %v825_v48  ;;  %v826_v55 = vadd.f32 %v820_v51, %v800_v36 }
 0x911   :  { %v846_v56 = vmul.f32 0.5, %v840_v53  ;;  %v851_v58 = vmul.f32 %v845_v52, %v781_v5  ;;  %v1427_v53 = vld [vmem:[#allocation2 + $0x150] sm:$0xff] }
 0x912   :  { %1423 = vtanh.f32 %v831_v54  ;;  %v832_v57 = vmul.f32 0.7978846, %v826_v55  ;;  %v1428_v54 = vld [vmem:[#allocation2 + $0x158] sm:$0xff] }
 0x913   :  { %v852_v59 = vmul.f32 %v846_v56, %v784_v46 }
 0x914   :  { %v1420_v60 = vpop.eup %1419  ;;  %1425 = vtanh.f32 %v832_v57 }
 0x915   :  { %v869_v0 = vpack.c.bf16 %v852_v59, %v851_v58  ;;  %v841_v6 = vadd.f32 1.0, %v1420_v60  ;;  %v1430_v58 = vld [vmem:[#allocation2 + $0x148] sm:$0xff] }
 0x916   :  { %v1422_v7 = vpop.eup %1421 }
 0x917   :  { %v847_v8 = vmul.f32 0.5, %v841_v6  ;;  %v842_v42 = vadd.f32 1.0, %v1422_v7  ;;  %1322 = vmatmul.mubr.msk.bf16.vlgmr.msra.gmra.mrb[36].mxu1 %vm872_vm3, %v869_v0  ;;  %v1464_v6 = vmov 1966171168  }
 0x918   :  { %1325 = vmatprep.mubr.msk.bf16.mxu1 %vm1460_vm1, %v1459_v43  ;;  %v1096_v7 = vunpack.c.l.s4 %v1464_v6 }
 0x919   :  { %v848_v11 = vmul.f32 0.5, %v842_v42  ;;  %v853_v12 = vmul.f32 %v847_v8, %v789_v21  ;;  %v952_v21 = vld [vmem:[#allocation2 + $0xe8] sm:$0xff]  ;;  %v1019_v8 = vsub.s32 6, %v1495_v13 }
 0x91a   :  { %v1097_v42 = vunpack.c.0.s8 %v1096_v7 }
 0x91b   :  { %v854_v18 = vmul.f32 %v848_v11, %v792_v27  ;;  %v955_v27 = vpack.c.bf16 %v952_v21, %v951_v25  ;;  %v1431_v11 = vld [vmem:[#allocation2 + $0x100] sm:$0xff] }
 0x91c   :  { %v1424_v14 = vpop.eup %1423 }
 0x91d   :  { %v843_v61 = vadd.f32 1.0, %v1424_v14  ;;  %v870_v5 = vpack.c.bf16 %v854_v18, %v853_v12  ;;  %1333 = vmatprep.subr.bf16.mxu0 %v955_v27  ;;  %v1020_v12 = vrot.slane %v1431_v11, %v1019_v8  ;;  %v1100_v18 = vsub.s32 %v1097_v42, %v1495_v13 }
 0x91e   :  { %v1426_v46 = vpop.eup %1425  ;;  %1334 = vmatpush3.bf16.msra.mxu0 %v955_v27 }
 0x91f   :  { %v849_v15 = vmul.f32 0.5, %v843_v61  ;;  %v844_v17 = vadd.f32 1.0, %v1426_v46  ;;  %1326 = vmatmul.mubr.msk.bf16.gmra.mrb[40].mxu1 %vm872_vm3, %v870_v5  ;;  %1335 = vmatprep.subr.bf16.mxu0 %v956_v28 }
 0x920   :  { %1329 = vmatprep.mubr.msk.bf16.mxu1 %vm1460_vm1, %v1459_v43 }
 0x921   :  { %v850_v22 = vmul.f32 0.5, %v844_v17  ;;  %v855_v23 = vmul.f32 %v849_v15, %v797_v20  ;;  %v944_v20 = vrot.slane %v1603_v62, %v943_v16 }
 0x922   :  { %1336 = vmatpush3.bf16.msra.mxu0 %v956_v28 }
 0x923   :  { %v856_v4 = vmul.f32 %v850_v22, %v800_v36 }
 0x925   :  { %v871_v26 = vpack.c.bf16 %v856_v4, %v855_v23 }
 0x927   :  { %1330 = vmatmul.mubr.msk.bf16.gmra.mrb[44].mxu1 %vm872_vm3, %v871_v26 }
 0x9ea   :  { %v916_v31 = vpop.f32.mrb[36].mxu1 }
 0x9eb   :  { %v1323_v30 = vpop.f32.mrb[37].mxu1 }
 0x9ec   :  { %v918_v9 = vpop.f32.mrb[38].mxu1 }
 0x9ed   :  { %v1324_v32 = vpop.f32.mrb[39].mxu1  ;;  %v937_v33 = vadd.f32 %v918_v9, %v1678_v3 }
 0x9ef   :  { %v945_v39 = vadd.f32 %v944_v20, %v937_v33 }
 0x9f2   :  { %v923_v34 = vpop.f32.mrb[40].mxu1 }
 0x9f3   :  { %v938_v24 = vadd.f32 %v923_v34, %v1684_v10  ;;  %v1327_v37 = vpop.f32.mrb[41].mxu1  ;;  %v1463_v10 = vmov 0.0|0.0  }
 0x9f4   :  { %v926_v38 = vpop.f32.mrb[42].mxu1  ;;  %1352 = vmatprep.subr.bf16.mxu0 %v1463_v10 }
 0x9f5   :  { %v946_v36 = vadd.f32 %v944_v20, %v938_v24  ;;  %v1328_v40 = vpop.f32.mrb[43].mxu1 }
 0x9f7   :  { %v949_v29 = vpack.c.bf16 %v946_v36, %v945_v39 }
 0x9f9   :  { %1337 = vmatprep.mubr.msk.bf16.mxu0 %vm151_vm0, %v949_v29 }
 0x9fa   :  { %v930_v41 = vpop.f32.mrb[44].mxu1 }
 0x9fb   :  { %v939_v35 = vadd.f32 %v930_v41, %v1691_v19  ;;  %v1331_v44 = vpop.f32.mrb[45].mxu1 }
 0x9fc   :  { %v933_v47 = vpop.f32.mrb[46].mxu1 }
 0x9fd   :  { %v940_v3 = vadd.f32 %v933_v47, %v1694_v2  ;;  %v1332_v49 = vpop.f32.mrb[47].mxu1  ;;  %v947_v62 = vadd.f32 %v944_v20, %v939_v35  ;;  %v1429_v2 = vld [vmem:[#allocation2 + $0x140] sm:$0xff] }
 0x9ff   :  { %v948_v50 = vadd.f32 %v944_v20, %v940_v3 }
 0xa01   :  { %v950_v45 = vpack.c.bf16 %v948_v50, %v947_v62 }
 0xa03   :  { %1338 = vmatmul.mubr.msk.bf16.vlgmr.msra.gmra.mrb[28].mxu0 %vm151_vm0, %v950_v45 }
 0xa04   :  { %1349 = vmatprep.mubr.msk.f32.mxu0 %vm1460_vm1, %v1459_v43  ;;  %v1016_v43 = vld [vmem:[#allocation2 + $0x108] sm:$0x3] }
 0xad6   :  { %v1339_v48 = vpop.f32.mrb[28].mxu0 }
 0xad7   :  { %v997_v51 = vpop.f32.mrb[29].mxu0  ;;  %v1014_v19 = vmul.f32 %v1427_v53, %v1339_v48 }
 0xad8   :  { %v1340_v52 = vpop.f32.mrb[30].mxu0  ;;  %v1012_v57 = vmul.f32 %v1429_v2, %v997_v51 }
 0xad9   :  { %v1015_v55 = vmul.f32 %v1428_v54, %v1340_v52  ;;  %v1000_v56 = vpop.f32.mrb[31].mxu0 }
 0xada   :  { %v1013_v59 = vmul.f32 %v1430_v58, %v1000_v56 }
 0xadb   :  { %v1356_v60 = vpack.c.bf16 %v1015_v55, %v1014_v19 }
 0xadc   :  { %v1353_v0 = vpack.c.bf16 %v1013_v59, %v1012_v57 }
 0xade   :  { %1354 = vmatpush3.bf16.msra.mxu0 %v1353_v0 }
 0xadf   :  { %1355 = vmatprep.subr.bf16.mxu0 %v1463_v10 }
 0xae2   :  { %1357 = vmatpush3.bf16.msra.mxu0 %v1356_v60 }
 0xae5   :  { %1350 = vmatmul.mubr.msk.f32.vlgmr.msra.gmra.mrb[32].mxu0 %vm151_vm0, %v1016_v43 }
 0xbb8   :  { %v1090_v14 = vpop.f32.mrb[32].mxu0 }
 0xbb9   :  { %v1091_v61 = vadd.f32 %v1090_v14, %v1020_v12  ;;  %v1351_v5 = vpop.f32.mrb[33].mxu0 }
 0xbbb   :  { %v1101_v46 = vrot.slane %v1091_v61, %v1100_v18 }
 0xbbd   :  { %v1102_v15 = vcombine.high %v1101_v46, %v1101_v46  ;;  %1154 = vst.sshfl [vmem:[%s1777_s2] sm:$0x1 pattern:$0x73625140] %v1101_v46 }
 0xbbf   :  { %1155 = vst.sshfl [vmem:[%s1777_s2 + $0x1] sm:$0x1 pattern:$0x73625140] %v1102_v15 }
 0xbc0   :  { %1125 = vsyncpa [#allocation3], 1 }

</bundles_post_ra>
